<compile_context>
chip_gen: v6e
topology: v6e:2x2x1
jax: 0.10.0
libtpu: 0.0.40
codegen_flags: <defaults>
</compile_context>

<pallas_src>
import jax
import jax.numpy as jnp
import numpy as np
from jax.experimental import pallas as pl
from jax.experimental.pallas import tpu as pltpu


def realnvp_kernel(x_ref, w1_ref, b1_ref, w2s_ref, b2s_ref, w2t_ref, b2t_ref,
                   o_ref):
    x = x_ref[...]                            # (tb, dim) — one dense load
    dim = x.shape[1]
    half = dim // 2
    hidden = w2s_ref.shape[0]                 # 128

    x1 = x[:, :half]                          # static in-vreg lane slices
    x2 = x[:, half:]

    mx = w1_ref.dtype                         # bf16 (or f32) MXU operand dtype

    # Fused first layer: one matmul -> [hs | ht], (tb, 2*hidden), f32 acc.
    h = jnp.dot(x1.astype(mx), w1_ref[...],
                preferred_element_type=jnp.float32) + b1_ref[...]
    h = jnp.maximum(h, 0.0)
    hs = h[:, :hidden]                        # lane-aligned split (hidden==128)
    ht = h[:, hidden:]

    s = jnp.dot(hs.astype(mx), w2s_ref[...],
                preferred_element_type=jnp.float32) + b2s_ref[...]
    t = jnp.dot(ht.astype(mx), w2t_ref[...],
                preferred_element_type=jnp.float32) + b2t_ref[...]

    x2_new = x2.astype(jnp.float32) * jnp.exp(s) + t

    # Single full-row store per tile (one vst per vreg row, not two masked
    # half-width stores).
    out = jnp.concatenate([x1.astype(jnp.float32), x2_new], axis=1)
    o_ref[...] = out.astype(o_ref.dtype)


def realnvp_block_forward(x, params, *, tb=None, use_bf16=True):
    """x: (B, dim) float32. params: weights laid out (in, out) / (1, out)."""
    B, dim = x.shape
    half = dim // 2
    hidden = params["w1s"].shape[1]

    mx = jnp.bfloat16 if use_bf16 else jnp.float32

    # Fuse the scale/translate first layers (tiny; constant-folds under jit).
    w1 = jnp.concatenate([params["w1s"], params["w1t"]], axis=1).astype(mx)
    b1 = jnp.concatenate([params["b1s"], params["b1t"]], axis=1).astype(jnp.float32)
    w2s = params["w2s"].astype(mx)
    w2t = params["w2t"].astype(mx)
    b2s = params["b2s"].astype(jnp.float32)
    b2t = params["b2t"].astype(jnp.float32)

    # Large batch tile: grid-step overhead dominates at small tiles; working
    # set at tb=8192, dim=32 is ~4 MB double-buffered (VMEM non-issue).
    if tb is None:
        tb = 8192
    tb = int(min(tb, B))
    tb = max(8, (tb // 8) * 8)                # (8, 128)-rule: sublane multiple of 8
    grid = (pl.cdiv(B, tb),)                  # ragged tail handled by Pallas

    const = lambda i: (0, 0)
    in_specs = [
        pl.BlockSpec((tb, dim), lambda i: (i, 0)),     # contiguous x row tile
        pl.BlockSpec((half, 2 * hidden), const),       # fused W1 (VMEM-resident)
        pl.BlockSpec((1, 2 * hidden), const),          # fused b1
        pl.BlockSpec((hidden, half), const),           # w2s
        pl.BlockSpec((1, half), const),                # b2s
        pl.BlockSpec((hidden, half), const),           # w2t
        pl.BlockSpec((1, half), const),                # b2t
    ]

    return pl.pallas_call(
        realnvp_kernel,
        out_shape=jax.ShapeDtypeStruct((B, dim), x.dtype),
        grid_spec=pltpu.PrefetchScalarGridSpec(
            num_scalar_prefetch=0,
            grid=grid,
            in_specs=in_specs,
            out_specs=pl.BlockSpec((tb, dim), lambda i: (i, 0)),
        ),
        compiler_params=pltpu.CompilerParams(
            dimension_semantics=("parallel",)),   # v7x: 2 TCs share the grid
    )(x, w1, b1, w2s, b2s, w2t, b2t)


def realnvp_block_reference(x, params):
    """Pure-JAX f32 reference matching the PyTorch forward (reverse=False)."""
    half = x.shape[1] // 2
    x1, x2 = x[:, :half], x[:, half:]
    hs = jnp.maximum(x1 @ params["w1s"] + params["b1s"], 0.0)
    s = hs @ params["w2s"] + params["b2s"]
    ht = jnp.maximum(x1 @ params["w1t"] + params["b1t"], 0.0)
    t = ht @ params["w2t"] + params["b2t"]
    return jnp.concatenate([x1, x2 * jnp.exp(s) + t], axis=1)


def init_params(key, dim, hidden=128, dtype=jnp.float32, zero_final=True):
    """zero_final=True matches the module (nn.init.zeros_ on the last Linear);
    zero_final=False uses small random finals so the math path is exercised."""
    half = dim // 2
    k1, k2, k3, k4, k5, k6, k7, k8 = jax.random.split(key, 8)
    b1 = 1.0 / np.sqrt(half)
    b2 = 1.0 / np.sqrt(hidden)
    if zero_final:
        w2s = jnp.zeros((hidden, half), dtype); b2s = jnp.zeros((1, half), dtype)
        w2t = jnp.zeros((hidden, half), dtype); b2t = jnp.zeros((1, half), dtype)
    else:
        w2s = jax.random.uniform(k5, (hidden, half), dtype, -b2, b2)
        b2s = jax.random.uniform(k6, (1, half), dtype, -b2, b2)
        w2t = jax.random.uniform(k7, (hidden, half), dtype, -b2, b2)
        b2t = jax.random.uniform(k8, (1, half), dtype, -b2, b2)
    return {
        "w1s": jax.random.uniform(k1, (half, hidden), dtype, -b1, b1),
        "b1s": jax.random.uniform(k2, (1, hidden), dtype, -b1, b1),
        "w2s": w2s, "b2s": b2s,
        "w1t": jax.random.uniform(k3, (half, hidden), dtype, -b1, b1),
        "b1t": jax.random.uniform(k4, (1, hidden), dtype, -b1, b1),
        "w2t": w2t, "b2t": b2t,
    }


if __name__ == "__main__":
    key = jax.random.PRNGKey(0)
    kx, kp = jax.random.split(key)

    B, dim = 256, 32
    x = jax.random.normal(kx, (B, dim), dtype=jnp.float32)

    # (a) Module-faithful init (zero final layers): s == t == 0 -> out == x
    #     exactly, even with bf16 MXU operands.  Default tb -> single tile.
    params0 = init_params(kp, dim, zero_final=True)
    out0 = jax.block_until_ready(realnvp_block_forward(x, params0))
    np.testing.assert_allclose(np.asarray(out0), np.asarray(x),
                               rtol=1e-6, atol=1e-6)

    # (b) Random final layers, multi-tile grid (tb=64 -> 4 steps, both v7x TCs).
    paramsr = init_params(kp, dim, zero_final=False)
    ref = realnvp_block_reference(x, paramsr)

    # f32 MXU operands: tight tolerance.
    out_f32 = jax.block_until_ready(
        realnvp_block_forward(x, paramsr, tb=64, use_bf16=False))
    np.testing.assert_allclose(np.asarray(out_f32), np.asarray(ref),
                               rtol=1e-5, atol=1e-5)

    # bf16 MXU operands with f32 accumulation: looser tolerance.
    out_bf16 = jax.block_until_ready(
        realnvp_block_forward(x, paramsr, tb=64, use_bf16=True))
    np.testing.assert_allclose(np.asarray(out_bf16), np.asarray(ref),
                               rtol=3e-2, atol=3e-2)

    # (c) Ragged batch: B=200 with tb=64 -> cdiv grid of 4, padded last tile.
    xr = x[:200]
    out_tail = jax.block_until_ready(
        realnvp_block_forward(xr, paramsr, tb=64, use_bf16=False))
    np.testing.assert_allclose(np.asarray(out_tail), np.asarray(ref[:200]),
                               rtol=1e-5, atol=1e-5)

    print("KERNEL_OK")
</pallas_src>

<mosaic_0001>
module attributes {stable_mosaic.version = 11 : i64} {
  func.func @realnvp_kernel(%arg0: i32, %arg1: memref<256x32xf32, #tpu.memory_space<vmem>>, %arg2: memref<16x256xbf16, #tpu.memory_space<vmem>>, %arg3: memref<1x256xf32, #tpu.memory_space<vmem>>, %arg4: memref<128x16xbf16, #tpu.memory_space<vmem>>, %arg5: memref<1x16xf32, #tpu.memory_space<vmem>>, %arg6: memref<128x16xbf16, #tpu.memory_space<vmem>>, %arg7: memref<1x16xf32, #tpu.memory_space<vmem>>, %arg8: memref<256x32xf32, #tpu.memory_space<vmem>>) attributes {dimension_semantics = [#tpu.dimension_semantics<parallel>], iteration_bounds = array<i64: 1>, scalar_prefetch = 0 : i64, scratch_operands = 0 : i64, tpu.core_type = #tpu.core_type<tc>, window_params = [{transform_indices = @transform_0, window_bounds = array<i64: 256, 32>}, {pipeline_mode = #tpu.pipeline_mode<synchronous>, transform_indices = @transform_1, window_bounds = array<i64: 16, 256>}, {pipeline_mode = #tpu.pipeline_mode<synchronous>, transform_indices = @transform_2, window_bounds = array<i64: 1, 256>}, {pipeline_mode = #tpu.pipeline_mode<synchronous>, transform_indices = @transform_3, window_bounds = array<i64: 128, 16>}, {pipeline_mode = #tpu.pipeline_mode<synchronous>, transform_indices = @transform_4, window_bounds = array<i64: 1, 16>}, {pipeline_mode = #tpu.pipeline_mode<synchronous>, transform_indices = @transform_5, window_bounds = array<i64: 128, 16>}, {pipeline_mode = #tpu.pipeline_mode<synchronous>, transform_indices = @transform_6, window_bounds = array<i64: 1, 16>}, {transform_indices = @transform_7, window_bounds = array<i64: 256, 32>}]} {
    %c0 = arith.constant 0 : index
    %c0_0 = arith.constant 0 : index
    %0 = vector.load %arg1[%c0, %c0_0] : memref<256x32xf32, #tpu.memory_space<vmem>>, vector<256x32xf32>
    %1 = vector.extract_strided_slice %0 {offsets = [0, 0], sizes = [256, 16], strides = [1, 1]} : vector<256x32xf32> to vector<256x16xf32>
    %2 = vector.extract_strided_slice %0 {offsets = [0, 16], sizes = [256, 16], strides = [1, 1]} : vector<256x32xf32> to vector<256x16xf32>
    %3 = arith.truncf %1 : vector<256x16xf32> to vector<256x16xbf16>
    %c0_1 = arith.constant 0 : index
    %c0_2 = arith.constant 0 : index
    %4 = vector.load %arg2[%c0_1, %c0_2] : memref<16x256xbf16, #tpu.memory_space<vmem>>, vector<16x256xbf16>
    %cst = arith.constant dense<0.000000e+00> : vector<256x256xf32>
    %5 = tpu.matmul %3, %4, %cst {dimension_numbers = #tpu.dot_dimension_numbers<[1], [0], [0], [1], [0, 0, 1, 1], [], []>} : vector<256x16xbf16>, vector<16x256xbf16>, vector<256x256xf32> -> vector<256x256xf32>
    %c0_3 = arith.constant 0 : index
    %c0_4 = arith.constant 0 : index
    %6 = vector.load %arg3[%c0_3, %c0_4] : memref<1x256xf32, #tpu.memory_space<vmem>>, vector<1x256xf32>
    %7 = vector.broadcast %6 : vector<1x256xf32> to vector<256x256xf32>
    %8 = arith.addf %5, %7 : vector<256x256xf32>
    %cst_5 = arith.constant 0.000000e+00 : f32
    %9 = vector.broadcast %cst_5 : f32 to vector<256x256xf32>
    %10 = arith.maximumf %8, %9 : vector<256x256xf32>
    %11 = vector.extract_strided_slice %10 {offsets = [0, 0], sizes = [256, 128], strides = [1, 1]} : vector<256x256xf32> to vector<256x128xf32>
    %12 = vector.extract_strided_slice %10 {offsets = [0, 128], sizes = [256, 128], strides = [1, 1]} : vector<256x256xf32> to vector<256x128xf32>
    %13 = arith.truncf %11 : vector<256x128xf32> to vector<256x128xbf16>
    %c0_6 = arith.constant 0 : index
    %c0_7 = arith.constant 0 : index
    %14 = vector.load %arg4[%c0_6, %c0_7] : memref<128x16xbf16, #tpu.memory_space<vmem>>, vector<128x16xbf16>
    %cst_8 = arith.constant dense<0.000000e+00> : vector<256x16xf32>
    %15 = tpu.matmul %13, %14, %cst_8 {dimension_numbers = #tpu.dot_dimension_numbers<[1], [0], [0], [1], [0, 0, 1, 1], [], []>} : vector<256x128xbf16>, vector<128x16xbf16>, vector<256x16xf32> -> vector<256x16xf32>
    %c0_9 = arith.constant 0 : index
    %c0_10 = arith.constant 0 : index
    %16 = vector.load %arg5[%c0_9, %c0_10] : memref<1x16xf32, #tpu.memory_space<vmem>>, vector<1x16xf32>
    %17 = vector.broadcast %16 : vector<1x16xf32> to vector<256x16xf32>
    %18 = arith.addf %15, %17 : vector<256x16xf32>
    %19 = arith.truncf %12 : vector<256x128xf32> to vector<256x128xbf16>
    %c0_11 = arith.constant 0 : index
    %c0_12 = arith.constant 0 : index
    %20 = vector.load %arg6[%c0_11, %c0_12] : memref<128x16xbf16, #tpu.memory_space<vmem>>, vector<128x16xbf16>
    %cst_13 = arith.constant dense<0.000000e+00> : vector<256x16xf32>
    %21 = tpu.matmul %19, %20, %cst_13 {dimension_numbers = #tpu.dot_dimension_numbers<[1], [0], [0], [1], [0, 0, 1, 1], [], []>} : vector<256x128xbf16>, vector<128x16xbf16>, vector<256x16xf32> -> vector<256x16xf32>
    %c0_14 = arith.constant 0 : index
    %c0_15 = arith.constant 0 : index
    %22 = vector.load %arg7[%c0_14, %c0_15] : memref<1x16xf32, #tpu.memory_space<vmem>>, vector<1x16xf32>
    %23 = vector.broadcast %22 : vector<1x16xf32> to vector<256x16xf32>
    %24 = arith.addf %21, %23 : vector<256x16xf32>
    %25 = math.exp %18 : vector<256x16xf32>
    %26 = arith.mulf %2, %25 : vector<256x16xf32>
    %27 = arith.addf %26, %24 : vector<256x16xf32>
    %28 = tpu.concatenate %1, %27 in 1 : vector<256x16xf32>, vector<256x16xf32> -> vector<256x32xf32>
    %c0_16 = arith.constant 0 : index
    %c0_17 = arith.constant 0 : index
    %29 = vector.load %arg8[%c0_16, %c0_17] : memref<256x32xf32, #tpu.memory_space<vmem>>, vector<256x32xf32>
    tpu.vector_store %arg8[%c0_16, %c0_17], %28 {strides = array<i32>} : memref<256x32xf32, #tpu.memory_space<vmem>>, vector<256x32xf32>,
    return
  }
  func.func @transform_0(%arg0: i32) -> (i32, i32) {
    %c0_i32 = arith.constant 0 : i32
    %c0_i32_0 = arith.constant 0 : i32
    return %arg0, %c0_i32 : i32, i32
  }
  func.func @transform_1(%arg0: i32) -> (i32, i32) {
    %c0_i32 = arith.constant 0 : i32
    %c0_i32_0 = arith.constant 0 : i32
    %c0_i32_1 = arith.constant 0 : i32
    return %c0_i32, %c0_i32_0 : i32, i32
  }
  func.func @transform_2(%arg0: i32) -> (i32, i32) {
    %c0_i32 = arith.constant 0 : i32
    %c0_i32_0 = arith.constant 0 : i32
    %c0_i32_1 = arith.constant 0 : i32
    return %c0_i32, %c0_i32_0 : i32, i32
  }
  func.func @transform_3(%arg0: i32) -> (i32, i32) {
    %c0_i32 = arith.constant 0 : i32
    %c0_i32_0 = arith.constant 0 : i32
    %c0_i32_1 = arith.constant 0 : i32
    return %c0_i32, %c0_i32_0 : i32, i32
  }
  func.func @transform_4(%arg0: i32) -> (i32, i32) {
    %c0_i32 = arith.constant 0 : i32
    %c0_i32_0 = arith.constant 0 : i32
    %c0_i32_1 = arith.constant 0 : i32
    return %c0_i32, %c0_i32_0 : i32, i32
  }
  func.func @transform_5(%arg0: i32) -> (i32, i32) {
    %c0_i32 = arith.constant 0 : i32
    %c0_i32_0 = arith.constant 0 : i32
    %c0_i32_1 = arith.constant 0 : i32
    return %c0_i32, %c0_i32_0 : i32, i32
  }
  func.func @transform_6(%arg0: i32) -> (i32, i32) {
    %c0_i32 = arith.constant 0 : i32
    %c0_i32_0 = arith.constant 0 : i32
    %c0_i32_1 = arith.constant 0 : i32
    return %c0_i32, %c0_i32_0 : i32, i32
  }
  func.func @transform_7(%arg0: i32) -> (i32, i32) {
    %c0_i32 = arith.constant 0 : i32
    %c0_i32_0 = arith.constant 0 : i32
    return %arg0, %c0_i32 : i32, i32
  }
}

</mosaic_0001>

<bundles_post_ra>
// kernel: tpu_custom_call.1
= control target key start
LH: loop header
LB: loop body
LE: loop exit
PB: predicated region body
PF: predicated region fallthrough
CT: control target
= control target key end

     0   :  { %v1667_v1 = vmov 0   ;;  %vm99_vm0 = vcmask 130048   ;;  %v79_v60 = vlaneseq  ;;  %vm1317_vm1 = vcmask 261120   ;;  %s2486_s1 = inlined_call_operand.vmem [shape: bf16[16,256], index: 1, kind: input, shape index: {}]   ;;  %s2487_s0 = inlined_call_operand.vmem [shape: f32[256,32], index: 0, kind: input, shape index: {}]   ;;  %s2488_s3 = inlined_call_operand.vmem [shape: bf16[128,16], index: 3, kind: input, shape index: {}]   ;;  %s2489_s5 = inlined_call_operand.vmem [shape: bf16[128,16], index: 5, kind: input, shape index: {}]   ;;  %s2490_s2 = inlined_call_operand.vmem [shape: f32[1,256], index: 2, kind: input, shape index: {}]   ;;  %s2491_s4 = inlined_call_operand.vmem [shape: f32[1,16], index: 4, kind: input, shape index: {}]   ;;  %s2492_s6 = inlined_call_operand.vmem [shape: f32[1,16], index: 6, kind: input, shape index: {}]   ;;  %s2493_s7 = inlined_call_operand.vmem [shape: f32[256,32], index: 7, kind: output, shape index: {}]  }
   0x1   :  { %v1552_v0 = vld [vmem:[%s2486_s1 + $0x4] ss:$8 sps:$4 sm:$0xff]   ;;  %180 = vmatprep.mubr.bf16.mxu0 %v1667_v1  ;;  %v1554_v2 = vld [vmem:[%s2486_s1] ss:$8 sps:$4 sm:$0xff]   ;;  %v29_v6 = vld [vmem:[%s2487_s0 + $0x10] sm:$0xff] }
   0x2   :  { %v27_v3 = vld [vmem:[%s2487_s0] sm:$0xff]  ;;  %v28_v4 = vld [vmem:[%s2487_s0 + $0x8] sm:$0xff]  ;;  %162 = vmatprep.subr.bf16.mxu0 %v1552_v0  ;;  %v30_v7 = vld [vmem:[%s2487_s0 + $0x18] sm:$0xff]  ;;  %v80_v61 = vshrl.u32 %v79_v60, 7 }
   0x3   :  { %v59_v5 = vpack.c.bf16 %v28_v4, %v27_v3  ;;  %163 = vmatpush1.bf16.msra.mxu0 %v1554_v2  ;;  %v60_v8 = vpack.c.bf16 %v30_v7, %v29_v6  ;;  %v1555_v9 = vld [vmem:[%s2488_s3 + $0x38] sm:$0xff]   ;;  %v1556_v10 = vld [vmem:[%s2488_s3 + $0x30] sm:$0xff]   ;;  %v31_v11 = vld [vmem:[%s2487_s0 + $0x20] sm:$0xff] }
   0x4   :  { %1438 = vmatprep.subr.bf16.mxu0 %v1555_v9  ;;  %v32_v12 = vld [vmem:[%s2487_s0 + $0x28] sm:$0xff]  ;;  %1534 = vmatprep.subr.bf16.mxu1 %v1555_v9  ;;  %v1558_v15 = vld [vmem:[%s2488_s3 + $0x20] sm:$0xff]   ;;  %v33_v16 = vld [vmem:[%s2487_s0 + $0x30] sm:$0xff]  ;;  %v81_v62 = vsub.s32 0, %v80_v61  ;;  %v85_v63 = vsub.s32 1, %v80_v61 }
   0x5   :  { %v1557_v13 = vld [vmem:[%s2488_s3 + $0x28] sm:$0xff]   ;;  %1542 = vmatpush3.bf16.msra.mxu1 %v1555_v9  ;;  %v61_v14 = vpack.c.bf16 %v32_v12, %v31_v11  ;;  %v34_v17 = vld [vmem:[%s2487_s0 + $0x38] sm:$0xff]  ;;  %v35_v19 = vld [vmem:[%s2487_s0 + $0x40] sm:$0xff] }
   0x6   :  { %1356 = vmatmul.mubr.msk.bf16.vlgmr.msra.gmra.mxu0 %vm99_vm0, %v59_v5  ;;  %1535 = vmatprep.subr.bf16.mxu1 %v1556_v10  ;;  %v62_v18 = vpack.c.bf16 %v34_v17, %v33_v16  ;;  %v36_v20 = vld [vmem:[%s2487_s0 + $0x48] sm:$0xff]  ;;  %v37_v22 = vld [vmem:[%s2487_s0 + $0x50] sm:$0xff]  ;;  %v38_v23 = vld [vmem:[%s2487_s0 + $0x58] sm:$0xff] }
   0x7   :  { %190 = vmatprep.mubr.bf16.mxu0 %v1667_v1  ;;  %1439 = vmatpush3.bf16.msra.mxu0 %v1555_v9  ;;  %v63_v21 = vpack.c.bf16 %v36_v20, %v35_v19  ;;  %v64_v24 = vpack.c.bf16 %v38_v23, %v37_v22  ;;  %v39_v25 = vld [vmem:[%s2487_s0 + $0x60] sm:$0xff]  ;;  %v40_v26 = vld [vmem:[%s2487_s0 + $0x68] sm:$0xff]  ;;  %v41_v28 = vld [vmem:[%s2487_s0 + $0x70] sm:$0xff] }
   0x8   :  { %1440 = vmatprep.subr.bf16.mxu0 %v1556_v10  ;;  %v65_v27 = vpack.c.bf16 %v40_v26, %v39_v25  ;;  %v42_v29 = vld [vmem:[%s2487_s0 + $0x78] sm:$0xff]  ;;  %v43_v31 = vld [vmem:[%s2487_s0 + $0x80] sm:$0xff]  ;;  %v44_v32 = vld [vmem:[%s2487_s0 + $0x88] sm:$0xff] }
   0x9   :  { %1543 = vmatpush3.bf16.msra.mxu1 %v1556_v10  ;;  %v66_v30 = vpack.c.bf16 %v42_v29, %v41_v28  ;;  %v67_v33 = vpack.c.bf16 %v44_v32, %v43_v31  ;;  %v45_v34 = vld [vmem:[%s2487_s0 + $0x90] sm:$0xff]  ;;  %v46_v35 = vld [vmem:[%s2487_s0 + $0x98] sm:$0xff]  ;;  %v47_v39 = vld [vmem:[%s2487_s0 + $0xa0] sm:$0xff] }
   0xa   :  { %1536 = vmatprep.subr.bf16.mxu1 %v1557_v13  ;;  %v1559_v36 = vld [vmem:[%s2488_s3 + $0x18] sm:$0xff]   ;;  %v68_v37 = vpack.c.bf16 %v46_v35, %v45_v34  ;;  %v1560_v38 = vld [vmem:[%s2488_s3 + $0x10] sm:$0xff]   ;;  %v48_v40 = vld [vmem:[%s2487_s0 + $0xa8] sm:$0xff] }
   0xb   :  { %1441 = vmatpush3.bf16.msra.mxu0 %v1556_v10  ;;  %v1561_v41 = vld [vmem:[%s2488_s3 + $0x8] sm:$0xff]   ;;  %v69_v42 = vpack.c.bf16 %v48_v40, %v47_v39  ;;  %v1562_v43 = vld [vmem:[%s2488_s3] sm:$0xff]   ;;  %v49_v44 = vld [vmem:[%s2487_s0 + $0xb0] sm:$0xff] }
   0xc   :  { %1442 = vmatprep.subr.bf16.mxu0 %v1557_v13  ;;  %v50_v45 = vld [vmem:[%s2487_s0 + $0xb8] sm:$0xff]  ;;  %v51_v47 = vld [vmem:[%s2487_s0 + $0xc0] sm:$0xff]  ;;  %v52_v48 = vld [vmem:[%s2487_s0 + $0xc8] sm:$0xff] }
   0xd   :  { %1544 = vmatpush3.bf16.msra.mxu1 %v1557_v13  ;;  %v70_v46 = vpack.c.bf16 %v50_v45, %v49_v44  ;;  %v71_v49 = vpack.c.bf16 %v52_v48, %v51_v47  ;;  %v53_v50 = vld [vmem:[%s2487_s0 + $0xd0] sm:$0xff]  ;;  %v54_v51 = vld [vmem:[%s2487_s0 + $0xd8] sm:$0xff]  ;;  %v55_v53 = vld [vmem:[%s2487_s0 + $0xe0] sm:$0xff] }
   0xe   :  { %1357 = vmatmul.mubr.msk.bf16.gmra.mxu0 %vm99_vm0, %v60_v8  ;;  %1537 = vmatprep.subr.bf16.mxu1 %v1558_v15  ;;  %v72_v52 = vpack.c.bf16 %v54_v51, %v53_v50  ;;  %v56_v54 = vld [vmem:[%s2487_s0 + $0xe8] sm:$0xff]  ;;  %v57_v56 = vld [vmem:[%s2487_s0 + $0xf0] sm:$0xff]  ;;  %v58_v57 = vld [vmem:[%s2487_s0 + $0xf8] sm:$0xff] }
   0xf   :  { %200 = vmatprep.mubr.bf16.mxu0 %v1667_v1  ;;  %1443 = vmatpush3.bf16.msra.mxu0 %v1557_v13  ;;  %v73_v55 = vpack.c.bf16 %v56_v54, %v55_v53  ;;  %v74_v58 = vpack.c.bf16 %v58_v57, %v57_v56  ;;  %v1870_v59 = vld [vmem:[%s2489_s5 + $0x38] sm:$0xff]   ;;  %v77_v0 = vld [vmem:[%s2490_s2] sm:$0x3]  ;;  %v1564_v60 = vld [vmem:[%s2489_s5 + $0x30] sm:$0xff]  }
  0x10   :  { %1444 = vmatprep.subr.bf16.mxu0 %v1558_v15  ;;  %v1878_v2 = vrot.slane %v77_v0, %v85_v63 }
  0x11   :  { %1545 = vmatpush3.bf16.msra.mxu1 %v1558_v15 }
  0x12   :  { %1538 = vmatprep.subr.bf16.mxu1 %v1559_v36 }
  0x13   :  { %1445 = vmatpush3.bf16.msra.mxu0 %v1558_v15 }
  0x14   :  { %1446 = vmatprep.subr.bf16.mxu0 %v1559_v36 }
  0x15   :  { %1546 = vmatpush3.bf16.msra.mxu1 %v1559_v36 }
  0x16   :  { %1358 = vmatmul.mubr.msk.bf16.gmra.mxu0 %vm99_vm0, %v61_v14  ;;  %1539 = vmatprep.subr.bf16.mxu1 %v1560_v38 }
  0x17   :  { %210 = vmatprep.mubr.bf16.mxu0 %v1667_v1  ;;  %1447 = vmatpush3.bf16.msra.mxu0 %v1559_v36 }
  0x18   :  { %1448 = vmatprep.subr.bf16.mxu0 %v1560_v38 }
  0x19   :  { %1547 = vmatpush3.bf16.msra.mxu1 %v1560_v38 }
  0x1a   :  { %1540 = vmatprep.subr.bf16.mxu1 %v1561_v41 }
  0x1b   :  { %1449 = vmatpush3.bf16.msra.mxu0 %v1560_v38 }
  0x1c   :  { %1450 = vmatprep.subr.bf16.mxu0 %v1561_v41 }
  0x1d   :  { %1548 = vmatpush3.bf16.msra.mxu1 %v1561_v41 }
  0x1e   :  { %1359 = vmatmul.mubr.msk.bf16.gmra.mxu0 %vm99_vm0, %v62_v18  ;;  %1541 = vmatprep.subr.bf16.mxu1 %v1562_v43 }
  0x1f   :  { %220 = vmatprep.mubr.bf16.mxu0 %v1667_v1  ;;  %1451 = vmatpush3.bf16.msra.mxu0 %v1561_v41 }
  0x20   :  { %1452 = vmatprep.subr.bf16.mxu0 %v1562_v43 }
  0x21   :  { %1549 = vmatpush3.bf16.msra.mxu1 %v1562_v43 }
  0x22   :  { %1486 = vmatprep.subr.bf16.mxu1 %v1870_v59 }
  0x23   :  { %1453 = vmatpush3.bf16.msra.mxu0 %v1562_v43 }
  0x26   :  { %1360 = vmatmul.mubr.msk.bf16.gmra.mxu0 %vm99_vm0, %v63_v21 }
  0x27   :  { %230 = vmatprep.mubr.bf16.mxu0 %v1667_v1 }
  0x2e   :  { %1361 = vmatmul.mubr.msk.bf16.gmra.mxu0 %vm99_vm0, %v64_v24 }
  0x2f   :  { %240 = vmatprep.mubr.bf16.mxu0 %v1667_v1 }
  0x36   :  { %1362 = vmatmul.mubr.msk.bf16.gmra.mxu0 %vm99_vm0, %v65_v27 }
  0x37   :  { %250 = vmatprep.mubr.bf16.mxu0 %v1667_v1 }
  0x3e   :  { %1363 = vmatmul.mubr.msk.bf16.gmra.mxu0 %vm99_vm0, %v66_v30 }
  0x3f   :  { %260 = vmatprep.mubr.bf16.mxu0 %v1667_v1 }
  0x46   :  { %1364 = vmatmul.mubr.msk.bf16.gmra.mxu0 %vm99_vm0, %v67_v33 }
  0x47   :  { %270 = vmatprep.mubr.bf16.mxu0 %v1667_v1 }
  0x4e   :  { %1365 = vmatmul.mubr.msk.bf16.gmra.mxu0 %vm99_vm0, %v68_v37 }
  0x4f   :  { %280 = vmatprep.mubr.bf16.mxu0 %v1667_v1 }
  0x56   :  { %1366 = vmatmul.mubr.msk.bf16.gmra.mxu0 %vm99_vm0, %v69_v42 }
  0x57   :  { %290 = vmatprep.mubr.bf16.mxu0 %v1667_v1 }
  0x5e   :  { %1367 = vmatmul.mubr.msk.bf16.gmra.mxu0 %vm99_vm0, %v70_v46 }
  0x5f   :  { %300 = vmatprep.mubr.bf16.mxu0 %v1667_v1 }
  0x66   :  { %1368 = vmatmul.mubr.msk.bf16.gmra.mxu0 %vm99_vm0, %v71_v49 }
  0x67   :  { %310 = vmatprep.mubr.bf16.mxu0 %v1667_v1 }
  0x6e   :  { %1369 = vmatmul.mubr.msk.bf16.gmra.mxu0 %vm99_vm0, %v72_v52 }
  0x6f   :  { %320 = vmatprep.mubr.bf16.mxu0 %v1667_v1 }
  0x76   :  { %1370 = vmatmul.mubr.msk.bf16.gmra.mxu0 %vm99_vm0, %v73_v55 }
  0x77   :  { %330 = vmatprep.mubr.bf16.mxu0 %v1667_v1  ;;  %v1876_v1 = vrot.slane %v77_v0, %v81_v62 }
  0x7e   :  { %1371 = vmatmul.mubr.msk.bf16.gmra.mxu0 %vm99_vm0, %v74_v58 }
  0xc6   :  { %v182_v3 = vpop.f32.mrf.mxu0 }
  0xc7   :  { %v183_v5 = vadd.f32 %v182_v3, %v1876_v1 }
  0xc8   :  { %v184_v4 = vpop.f32.mrf.mxu0 }
  0xc9   :  { %v185_v6 = vadd.f32 %v184_v4, %v1878_v2  ;;  %v341_v10 = vmax.f32 %v183_v5, 0.0  ;;  %v1565_v5 = vld [vmem:[%s2489_s5 + $0x28] sm:$0xff]  }
  0xca   :  { %v186_v7 = vpop.f32.mrf.mxu0 }
  0xcb   :  { %v187_v8 = vadd.f32 %v186_v7, %v1876_v1  ;;  %v342_v14 = vmax.f32 %v185_v6, 0.0 }
  0xcc   :  { %v188_v9 = vpop.f32.mrf.mxu0 }
  0xcd   :  { %v343_v11 = vmax.f32 %v187_v8, 0.0  ;;  %v189_v12 = vadd.f32 %v188_v9, %v1878_v2 }
  0xce   :  { %v192_v13 = vpop.f32.mrf.mxu0 }
  0xcf   :  { %v405_v15 = vpack.c.bf16 %v343_v11, %v341_v10  ;;  %v344_v16 = vmax.f32 %v189_v12, 0.0  ;;  %v193_v19 = vadd.f32 %v192_v13, %v1876_v1 }
  0xd0   :  { %v194_v17 = vpop.f32.mrf.mxu0 }
  0xd1   :  { %v1884_v18 = vpack.c.bf16 %v344_v16, %v342_v14  ;;  %v195_v20 = vadd.f32 %v194_v17, %v1878_v2  ;;  %1454 = vmatprep.mubr.bf16.mxu0 %v405_v15  ;;  %v345_v24 = vmax.f32 %v193_v19, 0.0 }
  0xd2   :  { %v196_v21 = vpop.f32.mrf.mxu0 }
  0xd3   :  { %v197_v22 = vadd.f32 %v196_v21, %v1876_v1  ;;  %v346_v28 = vmax.f32 %v195_v20, 0.0  ;;  %v1567_v21 = vld [vmem:[%s2489_s5 + $0x18] sm:$0xff]  }
  0xd4   :  { %v198_v23 = vpop.f32.mrf.mxu0 }
  0xd5   :  { %v347_v25 = vmax.f32 %v197_v22, 0.0  ;;  %v199_v26 = vadd.f32 %v198_v23, %v1878_v2 }
  0xd6   :  { %v202_v27 = vpop.f32.mrf.mxu0 }
  0xd7   :  { %v406_v29 = vpack.c.bf16 %v347_v25, %v345_v24  ;;  %v348_v30 = vmax.f32 %v199_v26, 0.0  ;;  %v203_v33 = vadd.f32 %v202_v27, %v1876_v1 }
  0xd8   :  { %v204_v31 = vpop.f32.mrf.mxu0 }
  0xd9   :  { %v1890_v32 = vpack.c.bf16 %v348_v30, %v346_v28  ;;  %v205_v34 = vadd.f32 %v204_v31, %v1878_v2  ;;  %1455 = vmatmul.mubr.bf16.vlgmr.msra.gmra.mxu0 %v406_v29  ;;  %v349_v38 = vmax.f32 %v203_v33, 0.0  ;;  %v1568_v30 = vld [vmem:[%s2489_s5 + $0x10] sm:$0xff]  }
  0xda   :  { %v206_v35 = vpop.f32.mrf.mxu0 }
  0xdb   :  { %v207_v36 = vadd.f32 %v206_v35, %v1876_v1  ;;  %v350_v42 = vmax.f32 %v205_v34, 0.0 }
  0xdc   :  { %v208_v37 = vpop.f32.mrf.mxu0 }
  0xdd   :  { %v351_v39 = vmax.f32 %v207_v36, 0.0  ;;  %v209_v40 = vadd.f32 %v208_v37, %v1878_v2 }
  0xde   :  { %v212_v41 = vpop.f32.mrf.mxu0 }
  0xdf   :  { %v352_v43 = vmax.f32 %v209_v40, 0.0  ;;  %v407_v44 = vpack.c.bf16 %v351_v39, %v349_v38  ;;  %v213_v47 = vadd.f32 %v212_v41, %v1876_v1  ;;  %v1569_v38 = vld [vmem:[%s2489_s5 + $0x8] sm:$0xff]  }
  0xe0   :  { %v214_v45 = vpop.f32.mrf.mxu0 }
  0xe1   :  { %v1896_v46 = vpack.c.bf16 %v352_v43, %v350_v42  ;;  %v215_v48 = vadd.f32 %v214_v45, %v1878_v2  ;;  %1458 = vmatprep.mubr.bf16.mxu1 %v407_v44  ;;  %v353_v52 = vmax.f32 %v213_v47, 0.0 }
  0xe2   :  { %v216_v49 = vpop.f32.mrf.mxu0 }
  0xe3   :  { %v217_v50 = vadd.f32 %v216_v49, %v1876_v1  ;;  %v354_v56 = vmax.f32 %v215_v48, 0.0  ;;  %v1570_v48 = vld [vmem:[%s2489_s5] sm:$0xff]  }
  0xe4   :  { %v218_v51 = vpop.f32.mrf.mxu0 }
  0xe5   :  { %v355_v53 = vmax.f32 %v217_v50, 0.0  ;;  %v219_v54 = vadd.f32 %v218_v51, %v1878_v2 }
  0xe6   :  { %v222_v55 = vpop.f32.mrf.mxu0 }
  0xe7   :  { %v408_v57 = vpack.c.bf16 %v355_v53, %v353_v52  ;;  %v356_v58 = vmax.f32 %v219_v54, 0.0  ;;  %v223_v63 = vadd.f32 %v222_v55, %v1876_v1 }
  0xe8   :  { %v224_v61 = vpop.f32.mrf.mxu0 }
  0xe9   :  { %v1905_v62 = vpack.c.bf16 %v356_v58, %v354_v56  ;;  %v225_v0 = vadd.f32 %v224_v61, %v1878_v2  ;;  %1459 = vmatmul.mubr.bf16.vlgmr.msra.gmra.mxu1 %v408_v57  ;;  %v357_v7 = vmax.f32 %v223_v63, 0.0 }
  0xea   :  { %v226_v3 = vpop.f32.mrf.mxu0  ;;  %1487 = vmatpush3.bf16.msra.mxu1 %v1870_v59  ;;  %v1566_v59 = vld [vmem:[%s2489_s5 + $0x20] sm:$0xff]  }
  0xeb   :  { %v227_v4 = vadd.f32 %v226_v3, %v1876_v1  ;;  %1488 = vmatprep.subr.bf16.mxu1 %v1564_v60  ;;  %v358_v11 = vmax.f32 %v225_v0, 0.0 }
  0xec   :  { %v228_v6 = vpop.f32.mrf.mxu0 }
  0xed   :  { %v359_v8 = vmax.f32 %v227_v4, 0.0  ;;  %v229_v9 = vadd.f32 %v228_v6, %v1878_v2 }
  0xee   :  { %v232_v10 = vpop.f32.mrf.mxu0  ;;  %1489 = vmatpush3.bf16.msra.mxu1 %v1564_v60 }
  0xef   :  { %v409_v12 = vpack.c.bf16 %v359_v8, %v357_v7  ;;  %v360_v13 = vmax.f32 %v229_v9, 0.0  ;;  %1490 = vmatprep.subr.bf16.mxu1 %v1565_v5  ;;  %v233_v16 = vadd.f32 %v232_v10, %v1876_v1 }
  0xf0   :  { %v234_v14 = vpop.f32.mrf.mxu0 }
  0xf1   :  { %v1918_v15 = vpack.c.bf16 %v360_v13, %v358_v11  ;;  %v235_v17 = vadd.f32 %v234_v14, %v1878_v2  ;;  %1462 = vmatprep.mubr.bf16.mxu1 %v409_v12  ;;  %v361_v23 = vmax.f32 %v233_v16, 0.0 }
  0xf2   :  { %v236_v19 = vpop.f32.mrf.mxu0  ;;  %1491 = vmatpush3.bf16.msra.mxu1 %v1565_v5 }
  0xf3   :  { %v237_v20 = vadd.f32 %v236_v19, %v1876_v1  ;;  %1492 = vmatprep.subr.bf16.mxu1 %v1566_v59  ;;  %v362_v27 = vmax.f32 %v235_v17, 0.0 }
  0xf4   :  { %v238_v22 = vpop.f32.mrf.mxu0 }
  0xf5   :  { %v363_v24 = vmax.f32 %v237_v20, 0.0  ;;  %v239_v25 = vadd.f32 %v238_v22, %v1878_v2 }
  0xf6   :  { %v242_v26 = vpop.f32.mrf.mxu0  ;;  %1493 = vmatpush3.bf16.msra.mxu1 %v1566_v59 }
  0xf7   :  { %v410_v28 = vpack.c.bf16 %v363_v24, %v361_v23  ;;  %v364_v29 = vmax.f32 %v239_v25, 0.0  ;;  %1494 = vmatprep.subr.bf16.mxu1 %v1567_v21  ;;  %v243_v34 = vadd.f32 %v242_v26, %v1876_v1 }
  0xf8   :  { %v244_v31 = vpop.f32.mrf.mxu0 }
  0xf9   :  { %v1930_v33 = vpack.c.bf16 %v364_v29, %v362_v27  ;;  %v245_v35 = vadd.f32 %v244_v31, %v1878_v2  ;;  %1463 = vmatmul.mubr.bf16.gmra.mxu1 %v410_v28  ;;  %v365_v40 = vmax.f32 %v243_v34, 0.0 }
  0xfa   :  { %v246_v36 = vpop.f32.mrf.mxu0  ;;  %1495 = vmatpush3.bf16.msra.mxu1 %v1567_v21 }
  0xfb   :  { %v247_v37 = vadd.f32 %v246_v36, %v1876_v1  ;;  %1496 = vmatprep.subr.bf16.mxu1 %v1568_v30  ;;  %v366_v44 = vmax.f32 %v245_v35, 0.0 }
  0xfc   :  { %v248_v39 = vpop.f32.mrf.mxu0 }
  0xfd   :  { %v367_v41 = vmax.f32 %v247_v37, 0.0  ;;  %v249_v42 = vadd.f32 %v248_v39, %v1878_v2 }
  0xfe   :  { %v252_v43 = vpop.f32.mrf.mxu0  ;;  %1497 = vmatpush3.bf16.msra.mxu1 %v1568_v30 }
  0xff   :  { %v411_v45 = vpack.c.bf16 %v367_v41, %v365_v40  ;;  %v368_v47 = vmax.f32 %v249_v42, 0.0  ;;  %1498 = vmatprep.subr.bf16.mxu1 %v1569_v38  ;;  %v253_v51 = vadd.f32 %v252_v43, %v1876_v1 }
 0x100   :  { %v254_v49 = vpop.f32.mrf.mxu0 }
 0x101   :  { %v1942_v50 = vpack.c.bf16 %v368_v47, %v366_v44  ;;  %v255_v52 = vadd.f32 %v254_v49, %v1878_v2  ;;  %1466 = vmatprep.mubr.bf16.mxu1 %v411_v45  ;;  %v369_v56 = vmax.f32 %v253_v51, 0.0 }
 0x102   :  { %v256_v53 = vpop.f32.mrf.mxu0  ;;  %1499 = vmatpush3.bf16.msra.mxu1 %v1569_v38 }
 0x103   :  { %v257_v54 = vadd.f32 %v256_v53, %v1876_v1  ;;  %1500 = vmatprep.subr.bf16.mxu1 %v1570_v48  ;;  %v370_v61 = vmax.f32 %v255_v52, 0.0 }
 0x104   :  { %v258_v55 = vpop.f32.mrf.mxu0 }
 0x105   :  { %v371_v57 = vmax.f32 %v257_v54, 0.0  ;;  %v259_v58 = vadd.f32 %v258_v55, %v1878_v2 }
 0x106   :  { %v262_v60 = vpop.f32.mrf.mxu0  ;;  %1501 = vmatpush3.bf16.msra.mxu1 %v1570_v48 }
 0x107   :  { %v412_v63 = vpack.c.bf16 %v371_v57, %v369_v56  ;;  %v372_v0 = vmax.f32 %v259_v58, 0.0  ;;  %v263_v5 = vadd.f32 %v262_v60, %v1876_v1 }
 0x108   :  { %v264_v3 = vpop.f32.mrf.mxu0 }
 0x109   :  { %v1948_v4 = vpack.c.bf16 %v372_v0, %v370_v61  ;;  %v265_v6 = vadd.f32 %v264_v3, %v1878_v2  ;;  %1467 = vmatmul.mubr.bf16.gmra.mxu1 %v412_v63  ;;  %v373_v10 = vmax.f32 %v263_v5, 0.0 }
 0x10a   :  { %v266_v7 = vpop.f32.mrf.mxu0 }
 0x10b   :  { %v267_v8 = vadd.f32 %v266_v7, %v1876_v1  ;;  %v374_v59 = vmax.f32 %v265_v6, 0.0 }
 0x10c   :  { %v268_v9 = vpop.f32.mrf.mxu0 }
 0x10d   :  { %v375_v11 = vmax.f32 %v267_v8, 0.0  ;;  %v269_v12 = vadd.f32 %v268_v9, %v1878_v2 }
 0x10e   :  { %v272_v13 = vpop.f32.mrf.mxu0 }
 0x10f   :  { %v413_v14 = vpack.c.bf16 %v375_v11, %v373_v10  ;;  %v376_v16 = vmax.f32 %v269_v12, 0.0  ;;  %v273_v20 = vadd.f32 %v272_v13, %v1876_v1 }
 0x110   :  { %v274_v17 = vpop.f32.mrf.mxu0 }
 0x111   :  { %v1954_v19 = vpack.c.bf16 %v376_v16, %v374_v59  ;;  %v275_v21 = vadd.f32 %v274_v17, %v1878_v2  ;;  %1470 = vmatprep.mubr.bf16.mxu1 %v413_v14  ;;  %v377_v25 = vmax.f32 %v273_v20, 0.0 }
 0x112   :  { %v276_v22 = vpop.f32.mrf.mxu0 }
 0x113   :  { %v277_v23 = vadd.f32 %v276_v22, %v1876_v1  ;;  %v378_v29 = vmax.f32 %v275_v21, 0.0 }
 0x114   :  { %v278_v24 = vpop.f32.mrf.mxu0 }
 0x115   :  { %v379_v26 = vmax.f32 %v277_v23, 0.0  ;;  %v279_v27 = vadd.f32 %v278_v24, %v1878_v2 }
 0x116   :  { %v282_v28 = vpop.f32.mrf.mxu0 }
 0x117   :  { %v414_v30 = vpack.c.bf16 %v379_v26, %v377_v25  ;;  %v380_v31 = vmax.f32 %v279_v27, 0.0  ;;  %v283_v36 = vadd.f32 %v282_v28, %v1876_v1 }
 0x118   :  { %v284_v34 = vpop.f32.mrf.mxu0 }
 0x119   :  { %v1960_v35 = vpack.c.bf16 %v380_v31, %v378_v29  ;;  %v285_v37 = vadd.f32 %v284_v34, %v1878_v2  ;;  %1471 = vmatmul.mubr.bf16.gmra.mxu1 %v414_v30  ;;  %v381_v41 = vmax.f32 %v283_v36, 0.0 }
 0x11a   :  { %v286_v38 = vpop.f32.mrf.mxu0 }
 0x11b   :  { %v287_v39 = vadd.f32 %v286_v38, %v1876_v1  ;;  %v382_v45 = vmax.f32 %v285_v37, 0.0 }
 0x11c   :  { %v288_v40 = vpop.f32.mrf.mxu0 }
 0x11d   :  { %v383_v42 = vmax.f32 %v287_v39, 0.0  ;;  %v289_v43 = vadd.f32 %v288_v40, %v1878_v2 }
 0x11e   :  { %v292_v44 = vpop.f32.mrf.mxu0 }
 0x11f   :  { %v415_v47 = vpack.c.bf16 %v383_v42, %v381_v41  ;;  %v384_v48 = vmax.f32 %v289_v43, 0.0  ;;  %v293_v52 = vadd.f32 %v292_v44, %v1876_v1 }
 0x120   :  { %v294_v49 = vpop.f32.mrf.mxu0 }
 0x121   :  { %v1966_v51 = vpack.c.bf16 %v384_v48, %v382_v45  ;;  %v295_v53 = vadd.f32 %v294_v49, %v1878_v2  ;;  %1474 = vmatprep.mubr.bf16.mxu1 %v415_v47  ;;  %v385_v57 = vmax.f32 %v293_v52, 0.0 }
 0x122   :  { %v296_v54 = vpop.f32.mrf.mxu0 }
 0x123   :  { %v297_v55 = vadd.f32 %v296_v54, %v1876_v1  ;;  %v386_v63 = vmax.f32 %v295_v53, 0.0 }
 0x124   :  { %v298_v56 = vpop.f32.mrf.mxu0 }
 0x125   :  { %v387_v58 = vmax.f32 %v297_v55, 0.0  ;;  %v299_v60 = vadd.f32 %v298_v56, %v1878_v2 }
 0x126   :  { %v302_v61 = vpop.f32.mrf.mxu0 }
 0x127   :  { %v416_v0 = vpack.c.bf16 %v387_v58, %v385_v57  ;;  %v388_v3 = vmax.f32 %v299_v60, 0.0  ;;  %v303_v7 = vadd.f32 %v302_v61, %v1876_v1 }
 0x128   :  { %v304_v5 = vpop.f32.mrf.mxu0 }
 0x129   :  { %v1972_v6 = vpack.c.bf16 %v388_v3, %v386_v63  ;;  %v305_v8 = vadd.f32 %v304_v5, %v1878_v2  ;;  %1475 = vmatmul.mubr.bf16.gmra.mxu1 %v416_v0  ;;  %v389_v12 = vmax.f32 %v303_v7, 0.0 }
 0x12a   :  { %v306_v9 = vpop.f32.mrf.mxu0 }
 0x12b   :  { %v307_v10 = vadd.f32 %v306_v9, %v1876_v1  ;;  %v390_v16 = vmax.f32 %v305_v8, 0.0 }
 0x12c   :  { %v308_v11 = vpop.f32.mrf.mxu0 }
 0x12d   :  { %v391_v13 = vmax.f32 %v307_v10, 0.0  ;;  %v309_v59 = vadd.f32 %v308_v11, %v1878_v2 }
 0x12e   :  { %v312_v14 = vpop.f32.mrf.mxu0 }
 0x12f   :  { %v417_v17 = vpack.c.bf16 %v391_v13, %v389_v12  ;;  %v392_v20 = vmax.f32 %v309_v59, 0.0  ;;  %v313_v23 = vadd.f32 %v312_v14, %v1876_v1 }
 0x130   :  { %v314_v21 = vpop.f32.mrf.mxu0 }
 0x131   :  { %v665_v22 = vpack.c.bf16 %v392_v20, %v390_v16  ;;  %v315_v24 = vadd.f32 %v314_v21, %v1878_v2  ;;  %1478 = vmatprep.mubr.bf16.mxu1 %v417_v17  ;;  %v393_v28 = vmax.f32 %v313_v23, 0.0 }
 0x132   :  { %v316_v25 = vpop.f32.mrf.mxu0 }
 0x133   :  { %v317_v26 = vadd.f32 %v316_v25, %v1876_v1  ;;  %v394_v34 = vmax.f32 %v315_v24, 0.0 }
 0x134   :  { %v318_v27 = vpop.f32.mrf.mxu0 }
 0x135   :  { %v395_v29 = vmax.f32 %v317_v26, 0.0  ;;  %v319_v30 = vadd.f32 %v318_v27, %v1878_v2 }
 0x136   :  { %v322_v31 = vpop.f32.mrf.mxu0 }
 0x137   :  { %v418_v36 = vpack.c.bf16 %v395_v29, %v393_v28  ;;  %v396_v37 = vmax.f32 %v319_v30, 0.0  ;;  %v323_v40 = vadd.f32 %v322_v31, %v1876_v1 }
 0x138   :  { %v324_v38 = vpop.f32.mrf.mxu0 }
 0x139   :  { %v666_v39 = vpack.c.bf16 %v396_v37, %v394_v34  ;;  %v325_v41 = vadd.f32 %v324_v38, %v1878_v2  ;;  %1479 = vmatmul.mubr.bf16.gmra.mxu1 %v418_v36  ;;  %v397_v45 = vmax.f32 %v323_v40, 0.0 }
 0x13a   :  { %v326_v42 = vpop.f32.mrf.mxu0 }
 0x13b   :  { %v327_v43 = vadd.f32 %v326_v42, %v1876_v1  ;;  %v398_v52 = vmax.f32 %v325_v41, 0.0 }
 0x13c   :  { %v328_v44 = vpop.f32.mrf.mxu0 }
 0x13d   :  { %v399_v47 = vmax.f32 %v327_v43, 0.0  ;;  %v329_v48 = vadd.f32 %v328_v44, %v1878_v2 }
 0x13e   :  { %v332_v49 = vpop.f32.mrf.mxu0 }
 0x13f   :  { %v419_v53 = vpack.c.bf16 %v399_v47, %v397_v45  ;;  %v400_v54 = vmax.f32 %v329_v48, 0.0  ;;  %v333_v57 = vadd.f32 %v332_v49, %v1876_v1 }
 0x140   :  { %v334_v55 = vpop.f32.mrf.mxu0 }
 0x141   :  { %v667_v56 = vpack.c.bf16 %v400_v54, %v398_v52  ;;  %v335_v58 = vadd.f32 %v334_v55, %v1878_v2  ;;  %1482 = vmatprep.mubr.bf16.mxu1 %v419_v53  ;;  %v401_v0 = vmax.f32 %v333_v57, 0.0 }
 0x142   :  { %v336_v60 = vpop.f32.mrf.mxu0 }
 0x143   :  { %v337_v61 = vadd.f32 %v336_v60, %v1876_v1  ;;  %v402_v7 = vmax.f32 %v335_v58, 0.0  ;;  %v2005_v1 = vld [vmem:[%s2491_s4] ss:$0 sm:$0xff]  ;;  %s1668_s4 = smov 16  }
 0x144   :  { %v338_v63 = vpop.f32.mrf.mxu0 }
 0x145   :  { %v403_v3 = vmax.f32 %v337_v61, 0.0  ;;  %v339_v5 = vadd.f32 %v338_v63, %v1878_v2 }
 0x147   :  { %v420_v8 = vpack.c.bf16 %v403_v3, %v401_v0  ;;  %v404_v9 = vmax.f32 %v339_v5, 0.0 }
 0x149   :  { %v668_v10 = vpack.c.bf16 %v404_v9, %v402_v7  ;;  %1483 = vmatmul.mubr.bf16.gmra.mxu1 %v420_v8 }
 0x14a   :  { %1502 = vmatprep.mubr.bf16.mxu1 %v1884_v18 }
 0x151   :  { %1503 = vmatmul.mubr.bf16.vlgmr.msra.gmra.mxu1 %v1890_v32 }
 0x152   :  { %1506 = vmatprep.mubr.bf16.mxu1 %v1896_v46 }
 0x159   :  { %1507 = vmatmul.mubr.bf16.gmra.mxu1 %v1905_v62 }
 0x15a   :  { %1510 = vmatprep.mubr.bf16.mxu1 %v1918_v15 }
 0x161   :  { %1511 = vmatmul.mubr.bf16.gmra.mxu1 %v1930_v33 }
 0x162   :  { %1514 = vmatprep.mubr.bf16.mxu1 %v1942_v50 }
 0x169   :  { %1515 = vmatmul.mubr.bf16.gmra.mxu1 %v1948_v4 }
 0x16a   :  { %1518 = vmatprep.mubr.bf16.mxu1 %v1954_v19 }
 0x171   :  { %1519 = vmatmul.mubr.bf16.gmra.mxu1 %v1960_v35 }
 0x172   :  { %1522 = vmatprep.mubr.bf16.mxu1 %v1966_v51 }
 0x179   :  { %1523 = vmatmul.mubr.bf16.gmra.mxu1 %v1972_v6 }
 0x17a   :  { %1526 = vmatprep.mubr.bf16.mxu1 %v665_v22 }
 0x181   :  { %1527 = vmatmul.mubr.bf16.gmra.mxu1 %v666_v39 }
 0x182   :  { %1530 = vmatprep.mubr.bf16.mxu1 %v667_v56 }
 0x189   :  { %1531 = vmatmul.mubr.bf16.gmra.mxu1 %v668_v10 }
 0x199   :  { %v1456_v2 = vpop.f32.mrf.mxu0 }
 0x19a   :  { %v535_v18 = vadd.f32 %v1456_v2, %v2005_v1 }
 0x19b   :  { %v526_v32 = vpop.f32.mrf.mxu0 }
 0x19c   :  { %v905_v46 = vmul.f32 1.442695, %v535_v18  ;;  %v527_v62 = vadd.f32 %v2005_v1, %v526_v32 }
 0x19d   :  { %v1457_v15 = vpop.f32.mrf.mxu0 }
 0x19e   :  { %1571 = vpow2.f32 %v905_v46  ;;  %v901_v33 = vmul.f32 1.442695, %v527_v62  ;;  %v538_v50 = vadd.f32 %v1457_v15, %v2005_v1 }
 0x19f   :  { %v529_v4 = vpop.f32.mrf.mxu0 }
 0x1a0   :  { %1573 = vpow2.f32 %v901_v33  ;;  %v907_v19 = vmul.f32 1.442695, %v538_v50  ;;  %v530_v35 = vadd.f32 %v2005_v1, %v529_v4 }
 0x1a2   :  { %1575 = vpow2.f32 %v907_v19  ;;  %v903_v51 = vmul.f32 1.442695, %v530_v35 }
 0x1a4   :  { %1577 = vpow2.f32 %v903_v51 }
 0x1a9   :  { %v1460_v6 = vpop.f32.mrf.mxu1 }
 0x1aa   :  { %v551_v11 = vadd.f32 %v1460_v6, %v2005_v1 }
 0x1ab   :  { %v1572_v12 = vpop.eup %1571  ;;  %v542_v13 = vpop.f32.mrf.mxu1 }
 0x1ac   :  { %v913_v59 = vmul.f32 1.442695, %v551_v11  ;;  %v543_v14 = vadd.f32 %v2005_v1, %v542_v13  ;;  %1001 = vrot.lane.b32.xlu1 %v1572_v12, %s1668_s4 }
 0x1ad   :  { %v1574_v16 = vpop.eup %1573  ;;  %v1461_v17 = vpop.f32.mrf.mxu1 }
 0x1ae   :  { %1579 = vpow2.f32 %v913_v59  ;;  %v909_v20 = vmul.f32 1.442695, %v543_v14  ;;  %v554_v21 = vadd.f32 %v1461_v17, %v2005_v1  ;;  %997 = vrot.lane.b32.xlu0 %v1574_v16, %s1668_s4 }
 0x1af   :  { %v1576_v22 = vpop.eup %1575  ;;  %v545_v23 = vpop.f32.mrf.mxu1 }
 0x1b0   :  { %v915_v24 = vmul.f32 1.442695, %v554_v21  ;;  %v546_v25 = vadd.f32 %v2005_v1, %v545_v23  ;;  %1003 = vrot.lane.b32.xlu1 %v1576_v22, %s1668_s4  ;;  %1581 = vpow2.f32 %v909_v20 }
 0x1b1   :  { %v1578_v26 = vpop.eup %1577 }
 0x1b2   :  { %1583 = vpow2.f32 %v915_v24  ;;  %v911_v27 = vmul.f32 1.442695, %v546_v25  ;;  %999 = vrot.lane.b32.xlu0 %v1578_v26, %s1668_s4 }
 0x1b4   :  { %1585 = vpow2.f32 %v911_v27 }
 0x1b9   :  { %v1464_v28 = vpop.f32.mrf.mxu1 }
 0x1ba   :  { %v567_v29 = vadd.f32 %v1464_v28, %v2005_v1 }
 0x1bb   :  { %v1580_v30 = vpop.eup %1579  ;;  %v558_v31 = vpop.f32.mrf.mxu1 }
 0x1bc   :  { %v921_v34 = vmul.f32 1.442695, %v567_v29  ;;  %v559_v36 = vadd.f32 %v2005_v1, %v558_v31  ;;  %1009 = vrot.lane.b32.xlu0 %v1580_v30, %s1668_s4 }
 0x1bd   :  { %v1465_v37 = vpop.f32.mrf.mxu1  ;;  %v1582_v38 = vpop.eup %1581 }
 0x1be   :  { %1587 = vpow2.f32 %v921_v34  ;;  %v917_v39 = vmul.f32 1.442695, %v559_v36  ;;  %v570_v40 = vadd.f32 %v1465_v37, %v2005_v1 }
 0x1bf   :  { %v1584_v41 = vpop.eup %1583  ;;  %v561_v42 = vpop.f32.mrf.mxu1 }
 0x1c0   :  { %v923_v43 = vmul.f32 1.442695, %v570_v40  ;;  %v562_v44 = vadd.f32 %v2005_v1, %v561_v42  ;;  %1011 = vrot.lane.b32.xlu1 %v1584_v41, %s1668_s4  ;;  %1005 = vrot.lane.b32.xlu0 %v1582_v38, %s1668_s4  ;;  %1589 = vpow2.f32 %v917_v39 }
 0x1c1   :  { %v1586_v47 = vpop.eup %1585 }
 0x1c2   :  { %1591 = vpow2.f32 %v923_v43  ;;  %v919_v45 = vmul.f32 1.442695, %v562_v44 }
 0x1c4   :  { %1007 = vrot.lane.b32.xlu1 %v1586_v47, %s1668_s4  ;;  %1593 = vpow2.f32 %v919_v45 }
 0x1c9   :  { %v1468_v48 = vpop.f32.mrf.mxu1 }
 0x1ca   :  { %v583_v49 = vadd.f32 %v1468_v48, %v2005_v1 }
 0x1cb   :  { %v1588_v52 = vpop.eup %1587  ;;  %v574_v53 = vpop.f32.mrf.mxu1 }
 0x1cc   :  { %v929_v54 = vmul.f32 1.442695, %v583_v49  ;;  %v575_v55 = vadd.f32 %v2005_v1, %v574_v53  ;;  %1017 = vrot.lane.b32.xlu0 %v1588_v52, %s1668_s4 }
 0x1cd   :  { %v1469_v56 = vpop.f32.mrf.mxu1  ;;  %v1590_v57 = vpop.eup %1589 }
 0x1ce   :  { %1595 = vpow2.f32 %v929_v54  ;;  %v925_v58 = vmul.f32 1.442695, %v575_v55  ;;  %v586_v60 = vadd.f32 %v1469_v56, %v2005_v1 }
 0x1cf   :  { %v1592_v61 = vpop.eup %1591  ;;  %v577_v63 = vpop.f32.mrf.mxu1 }
 0x1d0   :  { %v931_v0 = vmul.f32 1.442695, %v586_v60  ;;  %v578_v3 = vadd.f32 %v2005_v1, %v577_v63  ;;  %1019 = vrot.lane.b32.xlu1 %v1592_v61, %s1668_s4  ;;  %1013 = vrot.lane.b32.xlu0 %v1590_v57, %s1668_s4  ;;  %1597 = vpow2.f32 %v925_v58 }
 0x1d1   :  { %v1594_v7 = vpop.eup %1593 }
 0x1d2   :  { %1599 = vpow2.f32 %v931_v0  ;;  %v927_v5 = vmul.f32 1.442695, %v578_v3  ;;  %v2066_v0 = vld [vmem:[%s2492_s6] ss:$0 sm:$0xff] }
 0x1d4   :  { %1015 = vrot.lane.b32.xlu1 %v1594_v7, %s1668_s4  ;;  %1601 = vpow2.f32 %v927_v5 }
 0x1d9   :  { %v1472_v8 = vpop.f32.mrf.mxu1 }
 0x1da   :  { %v599_v9 = vadd.f32 %v1472_v8, %v2005_v1 }
 0x1db   :  { %v1596_v10 = vpop.eup %1595  ;;  %v590_v2 = vpop.f32.mrf.mxu1 }
 0x1dc   :  { %v937_v18 = vmul.f32 1.442695, %v599_v9  ;;  %v591_v32 = vadd.f32 %v2005_v1, %v590_v2  ;;  %1025 = vrot.lane.b32.xlu0 %v1596_v10, %s1668_s4 }
 0x1dd   :  { %v1473_v46 = vpop.f32.mrf.mxu1  ;;  %v1598_v62 = vpop.eup %1597 }
 0x1de   :  { %1603 = vpow2.f32 %v937_v18  ;;  %v933_v15 = vmul.f32 1.442695, %v591_v32  ;;  %v602_v33 = vadd.f32 %v1473_v46, %v2005_v1 }
 0x1df   :  { %v1600_v50 = vpop.eup %1599  ;;  %v593_v4 = vpop.f32.mrf.mxu1 }
 0x1e0   :  { %v939_v19 = vmul.f32 1.442695, %v602_v33  ;;  %v594_v35 = vadd.f32 %v2005_v1, %v593_v4  ;;  %1027 = vrot.lane.b32.xlu1 %v1600_v50, %s1668_s4  ;;  %1021 = vrot.lane.b32.xlu0 %v1598_v62, %s1668_s4  ;;  %1605 = vpow2.f32 %v933_v15 }
 0x1e1   :  { %v1602_v6 = vpop.eup %1601 }
 0x1e2   :  { %1607 = vpow2.f32 %v939_v19  ;;  %v935_v51 = vmul.f32 1.442695, %v594_v35 }
 0x1e4   :  { %1023 = vrot.lane.b32.xlu1 %v1602_v6, %s1668_s4  ;;  %1609 = vpow2.f32 %v935_v51 }
 0x1e9   :  { %v1476_v11 = vpop.f32.mrf.mxu1 }
 0x1ea   :  { %v615_v12 = vadd.f32 %v1476_v11, %v2005_v1 }
 0x1eb   :  { %v1604_v13 = vpop.eup %1603  ;;  %v606_v59 = vpop.f32.mrf.mxu1 }
 0x1ec   :  { %v945_v14 = vmul.f32 1.442695, %v615_v12  ;;  %v607_v16 = vadd.f32 %v2005_v1, %v606_v59  ;;  %1033 = vrot.lane.b32.xlu0 %v1604_v13, %s1668_s4 }
 0x1ed   :  { %v1477_v17 = vpop.f32.mrf.mxu1  ;;  %v1606_v20 = vpop.eup %1605 }
 0x1ee   :  { %1611 = vpow2.f32 %v945_v14  ;;  %v941_v21 = vmul.f32 1.442695, %v607_v16  ;;  %v618_v22 = vadd.f32 %v1477_v17, %v2005_v1 }
 0x1ef   :  { %v1608_v23 = vpop.eup %1607  ;;  %v609_v24 = vpop.f32.mrf.mxu1 }
 0x1f0   :  { %v947_v25 = vmul.f32 1.442695, %v618_v22  ;;  %v610_v26 = vadd.f32 %v2005_v1, %v609_v24  ;;  %1035 = vrot.lane.b32.xlu1 %v1608_v23, %s1668_s4  ;;  %1029 = vrot.lane.b32.xlu0 %v1606_v20, %s1668_s4  ;;  %1613 = vpow2.f32 %v941_v21 }
 0x1f1   :  { %v1610_v28 = vpop.eup %1609 }
 0x1f2   :  { %1615 = vpow2.f32 %v947_v25  ;;  %v943_v27 = vmul.f32 1.442695, %v610_v26 }
 0x1f4   :  { %1031 = vrot.lane.b32.xlu1 %v1610_v28, %s1668_s4  ;;  %1617 = vpow2.f32 %v943_v27 }
 0x1f9   :  { %v1480_v29 = vpop.f32.mrf.mxu1 }
 0x1fa   :  { %v631_v30 = vadd.f32 %v1480_v29, %v2005_v1 }
 0x1fb   :  { %v1612_v31 = vpop.eup %1611  ;;  %v622_v34 = vpop.f32.mrf.mxu1 }
 0x1fc   :  { %v953_v36 = vmul.f32 1.442695, %v631_v30  ;;  %v623_v37 = vadd.f32 %v2005_v1, %v622_v34  ;;  %1041 = vrot.lane.b32.xlu0 %v1612_v31, %s1668_s4 }
 0x1fd   :  { %v1481_v38 = vpop.f32.mrf.mxu1  ;;  %v1614_v39 = vpop.eup %1613 }
 0x1fe   :  { %1619 = vpow2.f32 %v953_v36  ;;  %v949_v40 = vmul.f32 1.442695, %v623_v37  ;;  %v634_v41 = vadd.f32 %v1481_v38, %v2005_v1 }
 0x1ff   :  { %v1616_v42 = vpop.eup %1615  ;;  %v625_v43 = vpop.f32.mrf.mxu1 }
 0x200   :  { %v955_v44 = vmul.f32 1.442695, %v634_v41  ;;  %v626_v45 = vadd.f32 %v2005_v1, %v625_v43  ;;  %1043 = vrot.lane.b32.xlu1 %v1616_v42, %s1668_s4  ;;  %1037 = vrot.lane.b32.xlu0 %v1614_v39, %s1668_s4  ;;  %1621 = vpow2.f32 %v949_v40 }
 0x201   :  { %v1618_v48 = vpop.eup %1617 }
 0x202   :  { %1623 = vpow2.f32 %v955_v44  ;;  %v951_v47 = vmul.f32 1.442695, %v626_v45 }
 0x204   :  { %1039 = vrot.lane.b32.xlu1 %v1618_v48, %s1668_s4  ;;  %1625 = vpow2.f32 %v951_v47 }
 0x209   :  { %v1484_v49 = vpop.f32.mrf.mxu1 }
 0x20a   :  { %v647_v52 = vadd.f32 %v1484_v49, %v2005_v1 }
 0x20b   :  { %v1620_v53 = vpop.eup %1619  ;;  %v638_v54 = vpop.f32.mrf.mxu1 }
 0x20c   :  { %v961_v55 = vmul.f32 1.442695, %v647_v52  ;;  %1049 = vrot.lane.b32.xlu0 %v1620_v53, %s1668_s4  ;;  %v639_v58 = vadd.f32 %v2005_v1, %v638_v54 }
 0x20d   :  { %v1485_v56 = vpop.f32.mrf.mxu1  ;;  %v1622_v57 = vpop.eup %1621 }
 0x20e   :  { %1627 = vpow2.f32 %v961_v55  ;;  %v650_v60 = vadd.f32 %v1485_v56, %v2005_v1  ;;  %v957_v7 = vmul.f32 1.442695, %v639_v58 }
 0x20f   :  { %v1624_v61 = vpop.eup %1623  ;;  %v641_v63 = vpop.f32.mrf.mxu1 }
 0x210   :  { %v963_v3 = vmul.f32 1.442695, %v650_v60  ;;  %1051 = vrot.lane.b32.xlu1 %v1624_v61, %s1668_s4  ;;  %1045 = vrot.lane.b32.xlu0 %v1622_v57, %s1668_s4  ;;  %v642_v8 = vadd.f32 %v2005_v1, %v641_v63 }
 0x211   :  { %v1504_v5 = vpop.f32.mrf.mxu1  ;;  %v1626_v10 = vpop.eup %1625 }
 0x212   :  { %1629 = vpow2.f32 %v963_v3  ;;  %v783_v9 = vadd.f32 %v1504_v5, %v2066_v0  ;;  %v959_v32 = vmul.f32 1.442695, %v642_v8 }
 0x213   :  { %v774_v2 = vpop.f32.mrf.mxu1  ;;  %1631 = vpow2.f32 %v957_v7 }
 0x214   :  { %1047 = vrot.lane.b32.xlu1 %v1626_v10, %s1668_s4  ;;  %1161 = vrot.lane.b32.xlu0 %v783_v9, %s1668_s4  ;;  %v775_v46 = vadd.f32 %v2066_v0, %v774_v2  ;;  %1633 = vpow2.f32 %v959_v32 }
 0x215   :  { %v1505_v18 = vpop.f32.mrf.mxu1 }
 0x216   :  { %v786_v62 = vadd.f32 %v1505_v18, %v2066_v0 }
 0x217   :  { %v777_v15 = vpop.f32.mrf.mxu1 }
 0x218   :  { %1163 = vrot.lane.b32.xlu1 %v786_v62, %s1668_s4  ;;  %1157 = vrot.lane.b32.xlu0 %v775_v46, %s1668_s4  ;;  %v778_v33 = vadd.f32 %v2066_v0, %v777_v15 }
 0x219   :  { %v1508_v1 = vpop.f32.mrf.mxu1 }
 0x21a   :  { %v799_v35 = vadd.f32 %v1508_v1, %v2066_v0 }
 0x21b   :  { %v1628_v50 = vpop.eup %1627  ;;  %v790_v4 = vpop.f32.mrf.mxu1 }
 0x21c   :  { %1159 = vrot.lane.b32.xlu1 %v778_v33, %s1668_s4  ;;  %1057 = vrot.lane.b32.xlu0 %v1628_v50, %s1668_s4  ;;  %v791_v16 = vadd.f32 %v2066_v0, %v790_v4 }
 0x21d   :  { %v1509_v19 = vpop.f32.mrf.mxu1 }
 0x21e   :  { %v802_v12 = vadd.f32 %v1509_v19, %v2066_v0  ;;  %v1002_v57 = vpop.permute.xlu1 %1001 }
 0x21f   :  { %v1630_v51 = vpop.eup %1629  ;;  %v793_v6 = vpop.f32.mrf.mxu1 }
 0x220   :  { %1059 = vrot.lane.b32.xlu1 %v1630_v51, %s1668_s4  ;;  %1169 = vrot.lane.b32.xlu0 %v799_v35, %s1668_s4  ;;  %v1632_v13 = vpop.eup %1631  ;;  %v794_v22 = vadd.f32 %v2066_v0, %v793_v6  ;;  %v2114_v52 = vpop.permute.xlu0 %997 }
 0x221   :  { %v1512_v11 = vpop.f32.mrf.mxu1  ;;  %v1634_v17 = vpop.eup %1633 }
 0x222   :  { %v815_v23 = vadd.f32 %v1512_v11, %v2066_v0  ;;  %v1004_v9 = vpop.permute.xlu1 %1003 }
 0x223   :  { %v806_v59 = vpop.f32.mrf.mxu1 }
 0x224   :  { %1171 = vrot.lane.b32.xlu1 %v802_v12, %s1668_s4  ;;  %1053 = vrot.lane.b32.xlu0 %v1632_v13, %s1668_s4  ;;  %v807_v26 = vadd.f32 %v2066_v0, %v806_v59  ;;  %v2122_v63 = vpop.permute.xlu0 %999 }
 0x225   :  { %v1513_v14 = vpop.f32.mrf.mxu1 }
 0x226   :  { %v818_v27 = vadd.f32 %v1513_v14, %v2066_v0 }
 0x227   :  { %v809_v20 = vpop.f32.mrf.mxu1 }
 0x228   :  { %1055 = vrot.lane.b32.xlu1 %v1634_v17, %s1668_s4  ;;  %1165 = vrot.lane.b32.xlu0 %v791_v16, %s1668_s4  ;;  %v810_v30 = vadd.f32 %v2066_v0, %v809_v20 }
 0x229   :  { %v1516_v21 = vpop.f32.mrf.mxu1 }
 0x22a   :  { %v831_v31 = vadd.f32 %v1516_v21, %v2066_v0 }
 0x22b   :  { %v822_v24 = vpop.f32.mrf.mxu1 }
 0x22c   :  { %1167 = vrot.lane.b32.xlu1 %v794_v22, %s1668_s4  ;;  %1177 = vrot.lane.b32.xlu0 %v815_v23, %s1668_s4  ;;  %v823_v37 = vadd.f32 %v2066_v0, %v822_v24 }
 0x22d   :  { %v1517_v25 = vpop.f32.mrf.mxu1 }
 0x22e   :  { %v834_v38 = vadd.f32 %v1517_v25, %v2066_v0  ;;  %v2128_v10 = vpop.permute.xlu0 %1009 }
 0x22f   :  { %v825_v28 = vpop.f32.mrf.mxu1 }
 0x230   :  { %1179 = vrot.lane.b32.xlu1 %v818_v27, %s1668_s4  ;;  %1173 = vrot.lane.b32.xlu0 %v807_v26, %s1668_s4  ;;  %v826_v41 = vadd.f32 %v2066_v0, %v825_v28 }
 0x231   :  { %v1520_v29 = vpop.f32.mrf.mxu1 }
 0x232   :  { %v847_v42 = vadd.f32 %v1520_v29, %v2066_v0  ;;  %v2134_v46 = vpop.permute.xlu1 %1011  ;;  %v2138_v62 = vpop.permute.xlu0 %1005  ;;  %v1635_v29 = vld [vmem:[%s2487_s0 + $0x10] sm:$0xff] }
 0x233   :  { %v838_v34 = vpop.f32.mrf.mxu1 }
 0x234   :  { %1175 = vrot.lane.b32.xlu1 %v810_v30, %s1668_s4  ;;  %1185 = vrot.lane.b32.xlu0 %v831_v31, %s1668_s4  ;;  %v839_v45 = vadd.f32 %v2066_v0, %v838_v34  ;;  %v1095_v30 = vmul.f32 %v1635_v29, %v1002_v57 }
 0x235   :  { %v1521_v36 = vpop.f32.mrf.mxu1 }
 0x236   :  { %v850_v47 = vadd.f32 %v1521_v36, %v2066_v0  ;;  %v2144_v50 = vpop.permute.xlu1 %1007 }
 0x237   :  { %v841_v39 = vpop.f32.mrf.mxu1 }
 0x238   :  { %1187 = vrot.lane.b32.xlu1 %v834_v38, %s1668_s4  ;;  %1181 = vrot.lane.b32.xlu0 %v823_v37, %s1668_s4  ;;  %v842_v53 = vadd.f32 %v2066_v0, %v841_v39  ;;  %v1636_v37 = vld [vmem:[%s2487_s0] sm:$0xff]  ;;  %v1637_v39 = vld [vmem:[%s2487_s0 + $0x18] sm:$0xff] }
 0x239   :  { %v1524_v40 = vpop.f32.mrf.mxu1  ;;  %v1093_v38 = vmul.f32 %v1636_v37, %v2114_v52 }
 0x23a   :  { %v863_v54 = vadd.f32 %v1524_v40, %v2066_v0  ;;  %v1096_v40 = vmul.f32 %v1637_v39, %v1004_v9 }
 0x23b   :  { %v854_v43 = vpop.f32.mrf.mxu1 }
 0x23c   :  { %1183 = vrot.lane.b32.xlu1 %v826_v41, %s1668_s4  ;;  %1193 = vrot.lane.b32.xlu0 %v847_v42, %s1668_s4  ;;  %v855_v58 = vadd.f32 %v2066_v0, %v854_v43 }
 0x23d   :  { %v1525_v44 = vpop.f32.mrf.mxu1 }
 0x23e   :  { %v866_v60 = vadd.f32 %v1525_v44, %v2066_v0  ;;  %v2146_v4 = vpop.permute.xlu0 %1017 }
 0x23f   :  { %v857_v48 = vpop.f32.mrf.mxu1 }
 0x240   :  { %1195 = vrot.lane.b32.xlu1 %v850_v47, %s1668_s4  ;;  %1189 = vrot.lane.b32.xlu0 %v839_v45, %s1668_s4  ;;  %v858_v5 = vadd.f32 %v2066_v0, %v857_v48  ;;  %v1638_v47 = vld [vmem:[%s2487_s0 + $0x8] sm:$0xff] }
 0x241   :  { %v1528_v49 = vpop.f32.mrf.mxu1  ;;  %v1094_v48 = vmul.f32 %v1638_v47, %v2122_v63 }
 0x242   :  { %v879_v7 = vadd.f32 %v1528_v49, %v2066_v0  ;;  %v2152_v51 = vpop.permute.xlu1 %1019  ;;  %v2155_v11 = vpop.permute.xlu0 %1013 }
 0x243   :  { %v870_v55 = vpop.f32.mrf.mxu1 }
 0x244   :  { %1191 = vrot.lane.b32.xlu1 %v842_v53, %s1668_s4  ;;  %1201 = vrot.lane.b32.xlu0 %v863_v54, %s1668_s4  ;;  %v871_v2 = vadd.f32 %v2066_v0, %v870_v55 }
 0x245   :  { %v1529_v56 = vpop.f32.mrf.mxu1 }
 0x246   :  { %v882_v18 = vadd.f32 %v1529_v56, %v2066_v0  ;;  %v2158_v12 = vpop.permute.xlu1 %1015  ;;  %v1639_v56 = vld [vmem:[%s2487_s0 + $0x30] sm:$0xff] }
 0x247   :  { %v873_v61 = vpop.f32.mrf.mxu1  ;;  %v1099_v57 = vmul.f32 %v1639_v56, %v2128_v10 }
 0x248   :  { %1203 = vrot.lane.b32.xlu1 %v866_v60, %s1668_s4  ;;  %1197 = vrot.lane.b32.xlu0 %v855_v58, %s1668_s4  ;;  %v874_v15 = vadd.f32 %v2066_v0, %v873_v61 }
 0x249   :  { %v1532_v3 = vpop.f32.mrf.mxu1 }
 0x24a   :  { %v895_v19 = vadd.f32 %v1532_v3, %v2066_v0  ;;  %v1640_v3 = vld [vmem:[%s2487_s0 + $0x38] sm:$0xff] }
 0x24b   :  { %v886_v8 = vpop.f32.mrf.mxu1 }
 0x24c   :  { %1199 = vrot.lane.b32.xlu1 %v858_v5, %s1668_s4  ;;  %1209 = vrot.lane.b32.xlu0 %v879_v7, %s1668_s4  ;;  %v887_v1 = vadd.f32 %v2066_v0, %v886_v8  ;;  %v1100_v5 = vmul.f32 %v1640_v3, %v2134_v46 }
 0x24d   :  { %v1533_v32 = vpop.f32.mrf.mxu1 }
 0x24e   :  { %v898_v6 = vadd.f32 %v1533_v32, %v2066_v0  ;;  %v2160_v13 = vpop.permute.xlu0 %1025 }
 0x24f   :  { %v889_v33 = vpop.f32.mrf.mxu1 }
 0x250   :  { %1211 = vrot.lane.b32.xlu1 %v882_v18, %s1668_s4  ;;  %1205 = vrot.lane.b32.xlu0 %v871_v2, %s1668_s4  ;;  %v890_v35 = vadd.f32 %v2066_v0, %v889_v33  ;;  %v1641_v2 = vld [vmem:[%s2487_s0 + $0x20] sm:$0xff]  ;;  %v1642_v33 = vld [vmem:[%s2487_s0 + $0x28] sm:$0xff] }
 0x251   :  { %v1097_v18 = vmul.f32 %v1641_v2, %v2138_v62  ;;  %v1643_v62 = vld [vmem:[%s2487_s0 + $0x50] sm:$0xff] }
 0x252   :  { %v2162_v59 = vpop.permute.xlu1 %1027  ;;  %v2164_v14 = vpop.permute.xlu0 %1021 }
 0x254   :  { %1207 = vrot.lane.b32.xlu1 %v874_v15, %s1668_s4  ;;  %1213 = vrot.lane.b32.xlu0 %v887_v1, %s1668_s4 }
 0x256   :  { %v2166_v16 = vpop.permute.xlu1 %1023 }
 0x258   :  { %1215 = vrot.lane.b32.xlu1 %v890_v35, %s1668_s4  ;;  %1217 = vrot.lane.b32.xlu0 %v895_v19, %s1668_s4  ;;  %v1098_v19 = vmul.f32 %v1642_v33, %v2144_v50  ;;  %v1103_v35 = vmul.f32 %v1643_v62, %v2146_v4  ;;  %v1644_v50 = vld [vmem:[%s2487_s0 + $0x58] sm:$0xff]  ;;  %v1645_v4 = vld [vmem:[%s2487_s0 + $0x40] sm:$0xff] }
 0x25c   :  { %1219 = vrot.lane.b32.xlu1 %v898_v6, %s1668_s4 }
 0x25e   :  { %v2168_v17 = vpop.permute.xlu0 %1033 }
 0x262   :  { %v2170_v20 = vpop.permute.xlu1 %1035  ;;  %v2172_v21 = vpop.permute.xlu0 %1029 }
 0x266   :  { %v2174_v0 = vpop.permute.xlu1 %1031 }
 0x26e   :  { %v2176_v22 = vpop.permute.xlu0 %1041 }
 0x272   :  { %v2178_v23 = vpop.permute.xlu1 %1043  ;;  %v2180_v24 = vpop.permute.xlu0 %1037 }
 0x276   :  { %v2182_v25 = vpop.permute.xlu1 %1039 }
 0x27e   :  { %v2184_v26 = vpop.permute.xlu0 %1049 }
 0x282   :  { %v2186_v27 = vpop.permute.xlu1 %1051  ;;  %v2188_v28 = vpop.permute.xlu0 %1045 }
 0x286   :  { %v2193_v31 = vpop.permute.xlu1 %1047  ;;  %v1162_v34 = vpop.permute.xlu0 %1161 }
 0x287   :  { %v1255_v36 = vadd.f32 %v1162_v34, %v1095_v30 }
 0x289   :  { %v1287_v41 = vsel %vm99_vm0, %v1635_v29, %v1255_v36 }
 0x28a   :  { %1320 = vst.msk [vmem:[%s2493_s7 + $0x10] sm:$0xff] %vm1317_vm1, %v1287_v41  ;;  %v1164_v42 = vpop.permute.xlu1 %1163  ;;  %v1158_v43 = vpop.permute.xlu0 %1157 }
 0x28b   :  { %v1256_v44 = vadd.f32 %v1164_v42, %v1096_v40  ;;  %v1253_v45 = vadd.f32 %v1158_v43, %v1093_v38  ;;  %v1101_v38 = vmul.f32 %v1645_v4, %v2155_v11  ;;  %v1646_v11 = vld [vmem:[%s2487_s0 + $0x48] sm:$0xff] }
 0x28d   :  { %v1288_v49 = vsel %vm99_vm0, %v1637_v39, %v1256_v44  ;;  %v1285_v52 = vsel %vm99_vm0, %v1636_v37, %v1253_v45  ;;  %v1104_v37 = vmul.f32 %v1644_v50, %v2152_v51  ;;  %v1102_v44 = vmul.f32 %v1646_v11, %v2158_v12  ;;  %v1647_v45 = vld [vmem:[%s2487_s0 + $0x70] sm:$0xff] }
 0x28e   :  { %1321 = vst.msk [vmem:[%s2493_s7 + $0x18] sm:$0xff] %vm1317_vm1, %v1288_v49  ;;  %1318 = vst.msk [vmem:[%s2493_s7] sm:$0xff] %vm1317_vm1, %v1285_v52  ;;  %v1160_v53 = vpop.permute.xlu1 %1159  ;;  %v2221_v54 = vpop.permute.xlu0 %1057 }
 0x28f   :  { %v1254_v55 = vadd.f32 %v1160_v53, %v1094_v48 }
 0x291   :  { %v1286_v58 = vsel %vm99_vm0, %v1638_v47, %v1254_v55  ;;  %v1107_v47 = vmul.f32 %v1647_v45, %v2160_v13  ;;  %v1648_v13 = vld [vmem:[%s2487_s0 + $0x78] sm:$0xff] }
 0x292   :  { %1319 = vst.msk [vmem:[%s2493_s7 + $0x8] sm:$0xff] %vm1317_vm1, %v1286_v58  ;;  %v2232_v60 = vpop.permute.xlu1 %1059  ;;  %v1170_v61 = vpop.permute.xlu0 %1169 }
 0x293   :  { %v1259_v63 = vadd.f32 %v1170_v61, %v1099_v57  ;;  %v1649_v57 = vld [vmem:[%s2487_s0 + $0x60] sm:$0xff] }
 0x294   :  { %v1105_v58 = vmul.f32 %v1649_v57, %v2164_v14  ;;  %v1650_v14 = vld [vmem:[%s2487_s0 + $0x68] sm:$0xff] }
 0x295   :  { %v1291_v7 = vsel %vm99_vm0, %v1639_v56, %v1259_v63  ;;  %v1108_v56 = vmul.f32 %v1648_v13, %v2162_v59 }
 0x296   :  { %1324 = vst.msk [vmem:[%s2493_s7 + $0x30] sm:$0xff] %vm1317_vm1, %v1291_v7  ;;  %v1172_v8 = vpop.permute.xlu1 %1171  ;;  %v2243_v9 = vpop.permute.xlu0 %1053 }
 0x297   :  { %v1260_v10 = vadd.f32 %v1172_v8, %v1100_v5  ;;  %v1106_v8 = vmul.f32 %v1650_v14, %v2166_v16 }
 0x299   :  { %v1292_v32 = vsel %vm99_vm0, %v1640_v3, %v1260_v10  ;;  %v1651_v10 = vld [vmem:[%s2487_s0 + $0x90] sm:$0xff] }
 0x29a   :  { %1325 = vst.msk [vmem:[%s2493_s7 + $0x38] sm:$0xff] %vm1317_vm1, %v1292_v32  ;;  %v2254_v46 = vpop.permute.xlu1 %1055  ;;  %v1166_v15 = vpop.permute.xlu0 %1165 }
 0x29b   :  { %v1257_v1 = vadd.f32 %v1166_v15, %v1097_v18 }
 0x29d   :  { %v1289_v6 = vsel %vm99_vm0, %v1641_v2, %v1257_v1  ;;  %v1111_v2 = vmul.f32 %v1651_v10, %v2168_v17  ;;  %v1652_v17 = vld [vmem:[%s2487_s0 + $0x98] sm:$0xff] }
 0x29e   :  { %1322 = vst.msk [vmem:[%s2493_s7 + $0x20] sm:$0xff] %vm1317_vm1, %v1289_v6  ;;  %v1168_v29 = vpop.permute.xlu1 %1167  ;;  %v1178_v30 = vpop.permute.xlu0 %1177 }
 0x29f   :  { %v1258_v34 = vadd.f32 %v1168_v29, %v1098_v19  ;;  %v1263_v36 = vadd.f32 %v1178_v30, %v1103_v35  ;;  %v1112_v19 = vmul.f32 %v1652_v17, %v2170_v20 }
 0x2a1   :  { %v1290_v39 = vsel %vm99_vm0, %v1642_v33, %v1258_v34  ;;  %v1295_v40 = vsel %vm99_vm0, %v1643_v62, %v1263_v36  ;;  %v1653_v62 = vld [vmem:[%s2487_s0 + $0x80] sm:$0xff] }
 0x2a2   :  { %1323 = vst.msk [vmem:[%s2493_s7 + $0x28] sm:$0xff] %vm1317_vm1, %v1290_v39  ;;  %1328 = vst.msk [vmem:[%s2493_s7 + $0x50] sm:$0xff] %vm1317_vm1, %v1295_v40  ;;  %v1180_v51 = vpop.permute.xlu1 %1179  ;;  %v1174_v41 = vpop.permute.xlu0 %1173  ;;  %v1109_v35 = vmul.f32 %v1653_v62, %v2172_v21  ;;  %v1654_v21 = vld [vmem:[%s2487_s0 + $0x88] sm:$0xff] }
 0x2a3   :  { %v1264_v42 = vadd.f32 %v1180_v51, %v1104_v37  ;;  %v1261_v43 = vadd.f32 %v1174_v41, %v1101_v38  ;;  %v1655_v37 = vld [vmem:[%s2487_s0 + $0xb0] sm:$0xff] }
 0x2a5   :  { %v1296_v48 = vsel %vm99_vm0, %v1644_v50, %v1264_v42  ;;  %v1293_v49 = vsel %vm99_vm0, %v1645_v4, %v1261_v43  ;;  %v1110_v50 = vmul.f32 %v1654_v21, %v2174_v0  ;;  %v1115_v4 = vmul.f32 %v1655_v37, %v2176_v22  ;;  %v1656_v22 = vld [vmem:[%s2487_s0 + $0xb8] sm:$0xff]  ;;  %v1657_v43 = vld [vmem:[%s2487_s0 + $0xa0] sm:$0xff] }
 0x2a6   :  { %1329 = vst.msk [vmem:[%s2493_s7 + $0x58] sm:$0xff] %vm1317_vm1, %v1296_v48  ;;  %1326 = vst.msk [vmem:[%s2493_s7 + $0x40] sm:$0xff] %vm1317_vm1, %v1293_v49  ;;  %v1176_v12 = vpop.permute.xlu1 %1175  ;;  %v1186_v52 = vpop.permute.xlu0 %1185  ;;  %v1116_v42 = vmul.f32 %v1656_v22, %v2178_v23 }
 0x2a7   :  { %v1262_v53 = vadd.f32 %v1176_v12, %v1102_v44  ;;  %v1267_v55 = vadd.f32 %v1186_v52, %v1107_v47  ;;  %v1659_v52 = vld [vmem:[%s2487_s0 + $0xd0] sm:$0xff] }
 0x2a9   :  { %v1294_v61 = vsel %vm99_vm0, %v1646_v11, %v1262_v53  ;;  %v1299_v63 = vsel %vm99_vm0, %v1647_v45, %v1267_v55  ;;  %v1113_v11 = vmul.f32 %v1657_v43, %v2180_v24  ;;  %v1658_v24 = vld [vmem:[%s2487_s0 + $0xa8] sm:$0xff]  ;;  %v1119_v53 = vmul.f32 %v1659_v52, %v2184_v26  ;;  %v1660_v26 = vld [vmem:[%s2487_s0 + $0xd8] sm:$0xff] }
 0x2aa   :  { %1327 = vst.msk [vmem:[%s2493_s7 + $0x48] sm:$0xff] %vm1317_vm1, %v1294_v61  ;;  %1332 = vst.msk [vmem:[%s2493_s7 + $0x70] sm:$0xff] %vm1317_vm1, %v1299_v63  ;;  %v1188_v59 = vpop.permute.xlu1 %1187  ;;  %v1182_v3 = vpop.permute.xlu0 %1181  ;;  %v1114_v12 = vmul.f32 %v1658_v24, %v2182_v25  ;;  %v1120_v61 = vmul.f32 %v1660_v26, %v2186_v27  ;;  %v1661_v63 = vld [vmem:[%s2487_s0 + $0xc0] sm:$0xff] }
 0x2ab   :  { %v1268_v5 = vadd.f32 %v1188_v59, %v1108_v56  ;;  %v1265_v7 = vadd.f32 %v1182_v3, %v1105_v58  ;;  %v1117_v59 = vmul.f32 %v1661_v63, %v2188_v28  ;;  %v1662_v28 = vld [vmem:[%s2487_s0 + $0xc8] sm:$0xff] }
 0x2ad   :  { %v1300_v18 = vsel %vm99_vm0, %v1648_v13, %v1268_v5  ;;  %v1297_v32 = vsel %vm99_vm0, %v1649_v57, %v1265_v7 }
 0x2ae   :  { %1333 = vst.msk [vmem:[%s2493_s7 + $0x78] sm:$0xff] %vm1317_vm1, %v1300_v18  ;;  %1330 = vst.msk [vmem:[%s2493_s7 + $0x60] sm:$0xff] %vm1317_vm1, %v1297_v32  ;;  %v1184_v16 = vpop.permute.xlu1 %1183  ;;  %v1194_v15 = vpop.permute.xlu0 %1193 }
 0x2af   :  { %v1266_v1 = vadd.f32 %v1184_v16, %v1106_v8  ;;  %v1271_v33 = vadd.f32 %v1194_v15, %v1111_v2  ;;  %v1663_v2 = vld [vmem:[%s2487_s0 + $0xe0] sm:$0xff] }
 0x2b0   :  { %v1121_v18 = vmul.f32 %v1663_v2, %v2243_v9  ;;  %v1664_v9 = vld [vmem:[%s2487_s0 + $0xf0] sm:$0xff] }
 0x2b1   :  { %v1298_v6 = vsel %vm99_vm0, %v1650_v14, %v1266_v1  ;;  %v1303_v29 = vsel %vm99_vm0, %v1651_v10, %v1271_v33  ;;  %v1118_v10 = vmul.f32 %v1662_v28, %v2193_v31 }
 0x2b2   :  { %1331 = vst.msk [vmem:[%s2493_s7 + $0x68] sm:$0xff] %vm1317_vm1, %v1298_v6  ;;  %1336 = vst.msk [vmem:[%s2493_s7 + $0x90] sm:$0xff] %vm1317_vm1, %v1303_v29  ;;  %v1196_v20 = vpop.permute.xlu1 %1195  ;;  %v1190_v30 = vpop.permute.xlu0 %1189 }
 0x2b3   :  { %v1272_v34 = vadd.f32 %v1196_v20, %v1112_v19  ;;  %v1269_v36 = vadd.f32 %v1190_v30, %v1109_v35  ;;  %v1665_v19 = vld [vmem:[%s2487_s0 + $0xe8] sm:$0xff] }
 0x2b5   :  { %v1304_v38 = vsel %vm99_vm0, %v1652_v17, %v1272_v34  ;;  %v1301_v39 = vsel %vm99_vm0, %v1653_v62, %v1269_v36  ;;  %v1123_v17 = vmul.f32 %v1664_v9, %v2221_v54  ;;  %v1122_v62 = vmul.f32 %v1665_v19, %v2254_v46  ;;  %v1666_v46 = vld [vmem:[%s2487_s0 + $0xf8] sm:$0xff] }
 0x2b6   :  { %1337 = vst.msk [vmem:[%s2493_s7 + $0x98] sm:$0xff] %vm1317_vm1, %v1304_v38  ;;  %1334 = vst.msk [vmem:[%s2493_s7 + $0x80] sm:$0xff] %vm1317_vm1, %v1301_v39  ;;  %v1192_v0 = vpop.permute.xlu1 %1191  ;;  %v1202_v40 = vpop.permute.xlu0 %1201  ;;  %v1124_v34 = vmul.f32 %v1666_v46, %v2232_v60 }
 0x2b7   :  { %v1270_v51 = vadd.f32 %v1192_v0, %v1110_v50  ;;  %v1275_v41 = vadd.f32 %v1202_v40, %v1115_v4 }
 0x2b9   :  { %v1302_v44 = vsel %vm99_vm0, %v1654_v21, %v1270_v51  ;;  %v1307_v45 = vsel %vm99_vm0, %v1655_v37, %v1275_v41 }
 0x2ba   :  { %1335 = vst.msk [vmem:[%s2493_s7 + $0x88] sm:$0xff] %vm1317_vm1, %v1302_v44  ;;  %1340 = vst.msk [vmem:[%s2493_s7 + $0xb0] sm:$0xff] %vm1317_vm1, %v1307_v45  ;;  %v1204_v23 = vpop.permute.xlu1 %1203  ;;  %v1198_v47 = vpop.permute.xlu0 %1197 }
 0x2bb   :  { %v1276_v48 = vadd.f32 %v1204_v23, %v1116_v42  ;;  %v1273_v49 = vadd.f32 %v1198_v47, %v1113_v11 }
 0x2bd   :  { %v1308_v55 = vsel %vm99_vm0, %v1656_v22, %v1276_v48  ;;  %v1305_v13 = vsel %vm99_vm0, %v1657_v43, %v1273_v49 }
 0x2be   :  { %1341 = vst.msk [vmem:[%s2493_s7 + $0xb8] sm:$0xff] %vm1317_vm1, %v1308_v55  ;;  %1338 = vst.msk [vmem:[%s2493_s7 + $0xa0] sm:$0xff] %vm1317_vm1, %v1305_v13  ;;  %v1200_v25 = vpop.permute.xlu1 %1199  ;;  %v1210_v56 = vpop.permute.xlu0 %1209 }
 0x2bf   :  { %v1274_v57 = vadd.f32 %v1200_v25, %v1114_v12  ;;  %v1279_v58 = vadd.f32 %v1210_v56, %v1119_v53 }
 0x2c1   :  { %v1306_v3 = vsel %vm99_vm0, %v1658_v24, %v1274_v57  ;;  %v1311_v5 = vsel %vm99_vm0, %v1659_v52, %v1279_v58 }
 0x2c2   :  { %1339 = vst.msk [vmem:[%s2493_s7 + $0xa8] sm:$0xff] %vm1317_vm1, %v1306_v3  ;;  %1344 = vst.msk [vmem:[%s2493_s7 + $0xd0] sm:$0xff] %vm1317_vm1, %v1311_v5  ;;  %v1212_v27 = vpop.permute.xlu1 %1211  ;;  %v1206_v7 = vpop.permute.xlu0 %1205 }
 0x2c3   :  { %v1280_v14 = vadd.f32 %v1212_v27, %v1120_v61  ;;  %v1277_v8 = vadd.f32 %v1206_v7, %v1117_v59 }
 0x2c5   :  { %v1312_v32 = vsel %vm99_vm0, %v1660_v26, %v1280_v14  ;;  %v1309_v16 = vsel %vm99_vm0, %v1661_v63, %v1277_v8 }
 0x2c6   :  { %1345 = vst.msk [vmem:[%s2493_s7 + $0xd8] sm:$0xff] %vm1317_vm1, %v1312_v32  ;;  %1342 = vst.msk [vmem:[%s2493_s7 + $0xc0] sm:$0xff] %vm1317_vm1, %v1309_v16  ;;  %v1208_v31 = vpop.permute.xlu1 %1207  ;;  %v1214_v15 = vpop.permute.xlu0 %1213 }
 0x2c7   :  { %v1278_v1 = vadd.f32 %v1208_v31, %v1118_v10  ;;  %v1281_v33 = vadd.f32 %v1214_v15, %v1121_v18 }
 0x2c9   :  { %v1310_v35 = vsel %vm99_vm0, %v1662_v28, %v1278_v1  ;;  %v1313_v6 = vsel %vm99_vm0, %v1663_v2, %v1281_v33 }
 0x2ca   :  { %1343 = vst.msk [vmem:[%s2493_s7 + $0xc8] sm:$0xff] %vm1317_vm1, %v1310_v35  ;;  %1346 = vst.msk [vmem:[%s2493_s7 + $0xe0] sm:$0xff] %vm1317_vm1, %v1313_v6  ;;  %v1216_v54 = vpop.permute.xlu1 %1215  ;;  %v1218_v29 = vpop.permute.xlu0 %1217 }
 0x2cb   :  { %v1282_v20 = vadd.f32 %v1216_v54, %v1122_v62  ;;  %v1283_v30 = vadd.f32 %v1218_v29, %v1123_v17 }
 0x2cd   :  { %v1314_v36 = vsel %vm99_vm0, %v1665_v19, %v1282_v20  ;;  %v1315_v21 = vsel %vm99_vm0, %v1664_v9, %v1283_v30 }
 0x2ce   :  { %1347 = vst.msk [vmem:[%s2493_s7 + $0xe8] sm:$0xff] %vm1317_vm1, %v1314_v36  ;;  %1348 = vst.msk [vmem:[%s2493_s7 + $0xf0] sm:$0xff] %vm1317_vm1, %v1315_v21  ;;  %v1220_v50 = vpop.permute.xlu1 %1219 }
 0x2cf   :  { %v1284_v37 = vadd.f32 %v1220_v50, %v1124_v34 }
 0x2d1   :  { %v1316_v4 = vsel %vm99_vm0, %v1666_v46, %v1284_v37 }
 0x2d2   :  { %1349 = vst.msk [vmem:[%s2493_s7 + $0xf8] sm:$0xff] %vm1317_vm1, %v1316_v4 }

</bundles_post_ra>
